<compile_context>
chip_gen: v5e
topology: v5e:2x2
jax: 0.10.0
libtpu: 0.0.40
codegen_flags: <defaults>
</compile_context>

<pallas_src>
import math

import jax
import jax.numpy as jnp
from jax.experimental import pallas as pl
from jax.experimental.pallas import tpu as pltpu


# ---------------- Pallas kernels ----------------

def _matmul_bias_relu_kernel(x_ref, w_ref, b_ref, o_ref):
    acc = jnp.dot(x_ref[...], w_ref[...], preferred_element_type=jnp.float32)
    o_ref[...] = jnp.maximum(acc + b_ref[...], 0.0).astype(o_ref.dtype)


def matmul_bias_relu(x, w, b, *, tm=256):
    """relu(x @ w + b). x:(M,K) f32, w:(K,N), b:(N,). Gridded over M."""
    M, K = x.shape
    K2, N = w.shape
    assert K == K2
    if M <= tm:
        block_m, grid_m = M, 1                      # full-dim block (always legal)
    else:
        block_m, grid_m = tm, pl.cdiv(M, tm)        # tm is a multiple of 8
    return pl.pallas_call(
        _matmul_bias_relu_kernel,
        out_shape=jax.ShapeDtypeStruct((M, N), jnp.float32),
        grid=(grid_m,),
        in_specs=[
            pl.BlockSpec((block_m, K), lambda i: (i, 0)),
            pl.BlockSpec((K, N), lambda i: (0, 0)),
            pl.BlockSpec((1, N), lambda i: (0, 0)),
        ],
        out_specs=pl.BlockSpec((block_m, N), lambda i: (i, 0)),
        compiler_params=pltpu.CompilerParams(
            dimension_semantics=("parallel",)),
    )(x, w, b.reshape(1, N))


def _mlp_head_kernel(x_ref, w1_ref, b1_ref, w2_ref, b2_ref, w3_ref, b3_ref,
                     o_ref):
    h = jnp.maximum(
        jnp.dot(x_ref[...], w1_ref[...], preferred_element_type=jnp.float32)
        + b1_ref[...], 0.0)
    h = jnp.maximum(
        jnp.dot(h, w2_ref[...], preferred_element_type=jnp.float32)
        + b2_ref[...], 0.0)
    # The reference module applies F.relu after linear3 as well.
    o_ref[...] = jnp.maximum(
        jnp.dot(h, w3_ref[...], preferred_element_type=jnp.float32)
        + b3_ref[...], 0.0).astype(o_ref.dtype)


def mlp_head(x, w1, b1, w2, b2, w3, b3, *, tm=512):
    """Fused linear1->relu->linear2->relu->linear3->relu; weights stay in VMEM."""
    M, K = x.shape
    N = w3.shape[1]
    if M <= tm:
        block_m, grid_m = M, 1
    else:
        block_m, grid_m = tm, pl.cdiv(M, tm)
    full = lambda i: (0, 0)
    return pl.pallas_call(
        _mlp_head_kernel,
        out_shape=jax.ShapeDtypeStruct((M, N), jnp.float32),
        grid=(grid_m,),
        in_specs=[
            pl.BlockSpec((block_m, K), lambda i: (i, 0)),
            pl.BlockSpec(w1.shape, full), pl.BlockSpec((1, w1.shape[1]), full),
            pl.BlockSpec(w2.shape, full), pl.BlockSpec((1, w2.shape[1]), full),
            pl.BlockSpec(w3.shape, full), pl.BlockSpec((1, w3.shape[1]), full),
        ],
        out_specs=pl.BlockSpec((block_m, N), lambda i: (i, 0)),
        compiler_params=pltpu.CompilerParams(
            dimension_semantics=("parallel",)),
    )(x, w1, b1.reshape(1, -1), w2, b2.reshape(1, -1), w3, b3.reshape(1, -1))


# ---------------- glue: channels-last im2col conv + pool ----------------

def _im2col_nhwc(x, kh, kw):
    """(B,H,W,C) -> (B*OH*OW, kh*kw*C) with (kh, kw, C) feature ordering."""
    B, H, W, C = x.shape
    OH, OW = H - kh + 1, W - kw + 1
    cols = [x[:, i:i + OH, j:j + OW, :] for i in range(kh) for j in range(kw)]
    patches = jnp.concatenate(cols, axis=-1)          # (B, OH, OW, kh*kw*C)
    return patches.reshape(B * OH * OW, kh * kw * C), (B, OH, OW)


def conv2d_relu_nhwc(x, w_mat, bias, kh, kw):
    """Valid conv, stride 1, fused ReLU.  NHWC in, NHWC out.
    w_mat: (kh*kw*C, OC) in matching (kh, kw, C) ordering."""
    patches, (B, OH, OW) = _im2col_nhwc(x, kh, kw)
    y = matmul_bias_relu(patches, w_mat, bias)        # (B*OH*OW, OC)
    return y.reshape(B, OH, OW, -1)


def maxpool2x2_nhwc(x):
    """nn.MaxPool2d(2, 2) semantics (floor) on NHWC input; XLA fuses this."""
    B, H, W, C = x.shape
    H2, W2 = H // 2, W // 2
    xc = x[:, : H2 * 2, : W2 * 2, :]
    return jnp.maximum(
        jnp.maximum(xc[:, 0::2, 0::2, :], xc[:, 0::2, 1::2, :]),
        jnp.maximum(xc[:, 1::2, 0::2, :], xc[:, 1::2, 1::2, :]),
    )


# ---------------- params ----------------

def init_params(key):
    """Parameters in PyTorch layouts (nn.Conv2d / nn.Linear default init)."""
    def uniform(k, shape, fan_in):
        bound = 1.0 / math.sqrt(fan_in)
        return jax.random.uniform(k, shape, jnp.float32, -bound, bound)

    ks = jax.random.split(key, 10)
    return {
        "conv1_w": uniform(ks[0], (10, 1, 3, 3), 1 * 3 * 3),
        "conv1_b": uniform(ks[1], (10,), 1 * 3 * 3),
        "conv2_w": uniform(ks[2], (10, 10, 3, 3), 10 * 3 * 3),
        "conv2_b": uniform(ks[3], (10,), 10 * 3 * 3),
        "lin1_w": uniform(ks[4], (100, 250), 250),
        "lin1_b": uniform(ks[5], (100,), 250),
        "lin2_w": uniform(ks[6], (50, 100), 100),
        "lin2_b": uniform(ks[7], (50,), 100),
        "lin3_w": uniform(ks[8], (10, 50), 50),
        "lin3_b": uniform(ks[9], (10,), 50),
    }


# Post-conv feature-map geometry implied by the module (28x28 grayscale input):
# conv1(3x3)->26x26, pool->13x13, conv2(3x3)->11x11, pool->5x5, 10 channels.
_C2, _HP, _WP = 10, 5, 5


def prepare_params(params):
    """One-time re-layout of PyTorch-layout params into matmul (K, N) form."""
    def conv_w_mat(w):  # (OC, C, kh, kw) -> (kh*kw*C, OC), (kh, kw, C) ordering
        OC, C, kh, kw = w.shape
        return w.transpose(2, 3, 1, 0).reshape(kh * kw * C, OC)

    # Fold the NCHW .view(B,-1) flatten-order permutation into linear1's weight:
    # activations arrive flattened in (h, w, c) order, PyTorch's weight columns
    # are indexed in (c, h, w) order.  Permute the weight rows once, here.
    nh = params["lin1_w"].shape[0]
    lin1_wm = (params["lin1_w"].T                    # (250, 100), rows in (c,h,w)
               .reshape(_C2, _HP, _WP, nh)           # (c, h, w, n)
               .transpose(1, 2, 0, 3)                # (h, w, c, n)
               .reshape(_C2 * _HP * _WP, nh))        # rows now in (h, w, c)

    return {
        "conv1_wm": conv_w_mat(params["conv1_w"]), "conv1_b": params["conv1_b"],
        "conv2_wm": conv_w_mat(params["conv2_w"]), "conv2_b": params["conv2_b"],
        "lin1_wm": lin1_wm, "lin1_b": params["lin1_b"],
        "lin2_wm": params["lin2_w"].T, "lin2_b": params["lin2_b"],
        "lin3_wm": params["lin3_w"].T, "lin3_b": params["lin3_b"],
    }


# ---------------- forward ----------------

@jax.jit
def net_forward(p, x):
    # x: (B, 1, 28, 28) NCHW float32, matching the PyTorch module's input
    # (28x28 grayscale so that linear1's fan-in of 250 = 10*5*5 holds).
    B = x.shape[0]
    # in_channels == 1, so NCHW and NHWC are byte-identical: free reshape.
    x = x.reshape(B, 28, 28, 1)
    x = conv2d_relu_nhwc(x, p["conv1_wm"], p["conv1_b"], 3, 3)   # (B,26,26,10)
    x = maxpool2x2_nhwc(x)                                       # (B,13,13,10)
    x = conv2d_relu_nhwc(x, p["conv2_wm"], p["conv2_b"], 3, 3)   # (B,11,11,10)
    x = maxpool2x2_nhwc(x)                                       # (B,5,5,10)
    # Contiguous (h, w, c) flatten; the (c, h, w) permutation required by
    # PyTorch's .view(B,-1) is already folded into lin1_wm (prepare_params).
    x = x.reshape(B, _C2 * _HP * _WP)
    # TODO(synk): nn.Dropout is identity in eval mode; training-mode RNG
    # dropout is not reproduced.
    return mlp_head(x, p["lin1_wm"], p["lin1_b"],
                    p["lin2_wm"], p["lin2_b"],
                    p["lin3_wm"], p["lin3_b"])                   # (B, 10)


if __name__ == "__main__":
    key = jax.random.PRNGKey(0)
    pkey, xkey = jax.random.split(key)
    params = prepare_params(init_params(pkey))
    x = jax.random.normal(xkey, (2, 1, 28, 28), jnp.float32)
    out = net_forward(params, x)
    jax.block_until_ready(out)
    assert out.shape == (2, 10), out.shape
    print("KERNEL_OK")
</pallas_src>

<mosaic_0001>
module attributes {stable_mosaic.version = 11 : i64} {
  func.func @_matmul_bias_relu_kernel(%arg0: i32, %arg1: memref<256x9xf32, #tpu.memory_space<vmem>>, %arg2: memref<9x10xf32, #tpu.memory_space<vmem>>, %arg3: memref<1x10xf32, #tpu.memory_space<vmem>>, %arg4: memref<256x10xf32, #tpu.memory_space<vmem>>) attributes {dimension_semantics = [#tpu.dimension_semantics<parallel>], iteration_bounds = array<i64: 6>, scalar_prefetch = 0 : i64, scratch_operands = 0 : i64, tpu.core_type = #tpu.core_type<tc>, window_params = [{transform_indices = @transform_0, window_bounds = array<i64: 256, 9>}, {pipeline_mode = #tpu.pipeline_mode<synchronous>, transform_indices = @transform_1, window_bounds = array<i64: 9, 10>}, {pipeline_mode = #tpu.pipeline_mode<synchronous>, transform_indices = @transform_2, window_bounds = array<i64: 1, 10>}, {transform_indices = @transform_3, window_bounds = array<i64: 256, 10>}]} {
    %c0 = arith.constant 0 : index
    %c0_0 = arith.constant 0 : index
    %0 = vector.load %arg1[%c0, %c0_0] : memref<256x9xf32, #tpu.memory_space<vmem>>, vector<256x9xf32>
    %c0_1 = arith.constant 0 : index
    %c0_2 = arith.constant 0 : index
    %1 = vector.load %arg2[%c0_1, %c0_2] : memref<9x10xf32, #tpu.memory_space<vmem>>, vector<9x10xf32>
    %cst = arith.constant dense<0.000000e+00> : vector<256x10xf32>
    %2 = tpu.matmul %0, %1, %cst {dimension_numbers = #tpu.dot_dimension_numbers<[1], [0], [0], [1], [0, 0, 1, 1], [], []>} : vector<256x9xf32>, vector<9x10xf32>, vector<256x10xf32> -> vector<256x10xf32>
    %c0_3 = arith.constant 0 : index
    %c0_4 = arith.constant 0 : index
    %3 = vector.load %arg3[%c0_3, %c0_4] : memref<1x10xf32, #tpu.memory_space<vmem>>, vector<1x10xf32>
    %4 = vector.broadcast %3 : vector<1x10xf32> to vector<256x10xf32>
    %5 = arith.addf %2, %4 : vector<256x10xf32>
    %cst_5 = arith.constant 0.000000e+00 : f32
    %6 = vector.broadcast %cst_5 : f32 to vector<256x10xf32>
    %7 = arith.maximumf %5, %6 : vector<256x10xf32>
    %c0_6 = arith.constant 0 : index
    %c0_7 = arith.constant 0 : index
    %8 = vector.load %arg4[%c0_6, %c0_7] : memref<256x10xf32, #tpu.memory_space<vmem>>, vector<256x10xf32>
    tpu.vector_store %arg4[%c0_6, %c0_7], %7 {strides = array<i32>} : memref<256x10xf32, #tpu.memory_space<vmem>>, vector<256x10xf32>,
    return
  }
  func.func @transform_0(%arg0: i32) -> (i32, i32) {
    %c0_i32 = arith.constant 0 : i32
    %c0_i32_0 = arith.constant 0 : i32
    return %arg0, %c0_i32 : i32, i32
  }
  func.func @transform_1(%arg0: i32) -> (i32, i32) {
    %c0_i32 = arith.constant 0 : i32
    %c0_i32_0 = arith.constant 0 : i32
    %c0_i32_1 = arith.constant 0 : i32
    return %c0_i32, %c0_i32_0 : i32, i32
  }
  func.func @transform_2(%arg0: i32) -> (i32, i32) {
    %c0_i32 = arith.constant 0 : i32
    %c0_i32_0 = arith.constant 0 : i32
    %c0_i32_1 = arith.constant 0 : i32
    return %c0_i32, %c0_i32_0 : i32, i32
  }
  func.func @transform_3(%arg0: i32) -> (i32, i32) {
    %c0_i32 = arith.constant 0 : i32
    %c0_i32_0 = arith.constant 0 : i32
    return %arg0, %c0_i32 : i32, i32
  }
}

module attributes {stable_mosaic.version = 11 : i64} {
  func.func @_matmul_bias_relu_kernel(%arg0: i32, %arg1: memref<242x90xf32, #tpu.memory_space<vmem>>, %arg2: memref<90x10xf32, #tpu.memory_space<vmem>>, %arg3: memref<1x10xf32, #tpu.memory_space<vmem>>, %arg4: memref<242x10xf32, #tpu.memory_space<vmem>>) attributes {dimension_semantics = [#tpu.dimension_semantics<parallel>], iteration_bounds = array<i64: 1>, scalar_prefetch = 0 : i64, scratch_operands = 0 : i64, tpu.core_type = #tpu.core_type<tc>, window_params = [{transform_indices = @transform_0, window_bounds = array<i64: 242, 90>}, {pipeline_mode = #tpu.pipeline_mode<synchronous>, transform_indices = @transform_1, window_bounds = array<i64: 90, 10>}, {pipeline_mode = #tpu.pipeline_mode<synchronous>, transform_indices = @transform_2, window_bounds = array<i64: 1, 10>}, {transform_indices = @transform_3, window_bounds = array<i64: 242, 10>}]} {
    %c0 = arith.constant 0 : index
    %c0_0 = arith.constant 0 : index
    %0 = vector.load %arg1[%c0, %c0_0] : memref<242x90xf32, #tpu.memory_space<vmem>>, vector<242x90xf32>
    %c0_1 = arith.constant 0 : index
    %c0_2 = arith.constant 0 : index
    %1 = vector.load %arg2[%c0_1, %c0_2] : memref<90x10xf32, #tpu.memory_space<vmem>>, vector<90x10xf32>
    %cst = arith.constant dense<0.000000e+00> : vector<242x10xf32>
    %2 = tpu.matmul %0, %1, %cst {dimension_numbers = #tpu.dot_dimension_numbers<[1], [0], [0], [1], [0, 0, 1, 1], [], []>} : vector<242x90xf32>, vector<90x10xf32>, vector<242x10xf32> -> vector<242x10xf32>
    %c0_3 = arith.constant 0 : index
    %c0_4 = arith.constant 0 : index
    %3 = vector.load %arg3[%c0_3, %c0_4] : memref<1x10xf32, #tpu.memory_space<vmem>>, vector<1x10xf32>
    %4 = vector.broadcast %3 : vector<1x10xf32> to vector<242x10xf32>
    %5 = arith.addf %2, %4 : vector<242x10xf32>
    %cst_5 = arith.constant 0.000000e+00 : f32
    %6 = vector.broadcast %cst_5 : f32 to vector<242x10xf32>
    %7 = arith.maximumf %5, %6 : vector<242x10xf32>
    %c0_6 = arith.constant 0 : index
    %c0_7 = arith.constant 0 : index
    %8 = vector.load %arg4[%c0_6, %c0_7] : memref<242x10xf32, #tpu.memory_space<vmem>>, vector<242x10xf32>
    tpu.vector_store %arg4[%c0_6, %c0_7], %7 {strides = array<i32>} : memref<242x10xf32, #tpu.memory_space<vmem>>, vector<242x10xf32>,
    return
  }
  func.func @transform_0(%arg0: i32) -> (i32, i32) {
    %c0_i32 = arith.constant 0 : i32
    %c0_i32_0 = arith.constant 0 : i32
    return %arg0, %c0_i32 : i32, i32
  }
  func.func @transform_1(%arg0: i32) -> (i32, i32) {
    %c0_i32 = arith.constant 0 : i32
    %c0_i32_0 = arith.constant 0 : i32
    %c0_i32_1 = arith.constant 0 : i32
    return %c0_i32, %c0_i32_0 : i32, i32
  }
  func.func @transform_2(%arg0: i32) -> (i32, i32) {
    %c0_i32 = arith.constant 0 : i32
    %c0_i32_0 = arith.constant 0 : i32
    %c0_i32_1 = arith.constant 0 : i32
    return %c0_i32, %c0_i32_0 : i32, i32
  }
  func.func @transform_3(%arg0: i32) -> (i32, i32) {
    %c0_i32 = arith.constant 0 : i32
    %c0_i32_0 = arith.constant 0 : i32
    return %arg0, %c0_i32 : i32, i32
  }
}

module attributes {stable_mosaic.version = 11 : i64} {
  func.func @_mlp_head_kernel(%arg0: i32, %arg1: memref<2x250xf32, #tpu.memory_space<vmem>>, %arg2: memref<250x100xf32, #tpu.memory_space<vmem>>, %arg3: memref<1x100xf32, #tpu.memory_space<vmem>>, %arg4: memref<100x50xf32, #tpu.memory_space<vmem>>, %arg5: memref<1x50xf32, #tpu.memory_space<vmem>>, %arg6: memref<50x10xf32, #tpu.memory_space<vmem>>, %arg7: memref<1x10xf32, #tpu.memory_space<vmem>>, %arg8: memref<2x10xf32, #tpu.memory_space<vmem>>) attributes {dimension_semantics = [#tpu.dimension_semantics<parallel>], iteration_bounds = array<i64: 1>, scalar_prefetch = 0 : i64, scratch_operands = 0 : i64, tpu.core_type = #tpu.core_type<tc>, window_params = [{transform_indices = @transform_0, window_bounds = array<i64: 2, 250>}, {pipeline_mode = #tpu.pipeline_mode<synchronous>, transform_indices = @transform_1, window_bounds = array<i64: 250, 100>}, {pipeline_mode = #tpu.pipeline_mode<synchronous>, transform_indices = @transform_2, window_bounds = array<i64: 1, 100>}, {pipeline_mode = #tpu.pipeline_mode<synchronous>, transform_indices = @transform_3, window_bounds = array<i64: 100, 50>}, {pipeline_mode = #tpu.pipeline_mode<synchronous>, transform_indices = @transform_4, window_bounds = array<i64: 1, 50>}, {pipeline_mode = #tpu.pipeline_mode<synchronous>, transform_indices = @transform_5, window_bounds = array<i64: 50, 10>}, {pipeline_mode = #tpu.pipeline_mode<synchronous>, transform_indices = @transform_6, window_bounds = array<i64: 1, 10>}, {transform_indices = @transform_7, window_bounds = array<i64: 2, 10>}]} {
    %c0 = arith.constant 0 : index
    %c0_0 = arith.constant 0 : index
    %0 = vector.load %arg1[%c0, %c0_0] : memref<2x250xf32, #tpu.memory_space<vmem>>, vector<2x250xf32>
    %c0_1 = arith.constant 0 : index
    %c0_2 = arith.constant 0 : index
    %1 = vector.load %arg2[%c0_1, %c0_2] : memref<250x100xf32, #tpu.memory_space<vmem>>, vector<250x100xf32>
    %cst = arith.constant dense<0.000000e+00> : vector<2x100xf32>
    %2 = tpu.matmul %0, %1, %cst {dimension_numbers = #tpu.dot_dimension_numbers<[1], [0], [0], [1], [0, 0, 1, 1], [], []>} : vector<2x250xf32>, vector<250x100xf32>, vector<2x100xf32> -> vector<2x100xf32>
    %c0_3 = arith.constant 0 : index
    %c0_4 = arith.constant 0 : index
    %3 = vector.load %arg3[%c0_3, %c0_4] : memref<1x100xf32, #tpu.memory_space<vmem>>, vector<1x100xf32>
    %4 = vector.broadcast %3 : vector<1x100xf32> to vector<2x100xf32>
    %5 = arith.addf %2, %4 : vector<2x100xf32>
    %cst_5 = arith.constant 0.000000e+00 : f32
    %6 = vector.broadcast %cst_5 : f32 to vector<2x100xf32>
    %7 = arith.maximumf %5, %6 : vector<2x100xf32>
    %c0_6 = arith.constant 0 : index
    %c0_7 = arith.constant 0 : index
    %8 = vector.load %arg4[%c0_6, %c0_7] : memref<100x50xf32, #tpu.memory_space<vmem>>, vector<100x50xf32>
    %cst_8 = arith.constant dense<0.000000e+00> : vector<2x50xf32>
    %9 = tpu.matmul %7, %8, %cst_8 {dimension_numbers = #tpu.dot_dimension_numbers<[1], [0], [0], [1], [0, 0, 1, 1], [], []>} : vector<2x100xf32>, vector<100x50xf32>, vector<2x50xf32> -> vector<2x50xf32>
    %c0_9 = arith.constant 0 : index
    %c0_10 = arith.constant 0 : index
    %10 = vector.load %arg5[%c0_9, %c0_10] : memref<1x50xf32, #tpu.memory_space<vmem>>, vector<1x50xf32>
    %11 = vector.broadcast %10 : vector<1x50xf32> to vector<2x50xf32>
    %12 = arith.addf %9, %11 : vector<2x50xf32>
    %cst_11 = arith.constant 0.000000e+00 : f32
    %13 = vector.broadcast %cst_11 : f32 to vector<2x50xf32>
    %14 = arith.maximumf %12, %13 : vector<2x50xf32>
    %c0_12 = arith.constant 0 : index
    %c0_13 = arith.constant 0 : index
    %15 = vector.load %arg6[%c0_12, %c0_13] : memref<50x10xf32, #tpu.memory_space<vmem>>, vector<50x10xf32>
    %cst_14 = arith.constant dense<0.000000e+00> : vector<2x10xf32>
    %16 = tpu.matmul %14, %15, %cst_14 {dimension_numbers = #tpu.dot_dimension_numbers<[1], [0], [0], [1], [0, 0, 1, 1], [], []>} : vector<2x50xf32>, vector<50x10xf32>, vector<2x10xf32> -> vector<2x10xf32>
    %c0_15 = arith.constant 0 : index
    %c0_16 = arith.constant 0 : index
    %17 = vector.load %arg7[%c0_15, %c0_16] : memref<1x10xf32, #tpu.memory_space<vmem>>, vector<1x10xf32>
    %18 = vector.broadcast %17 : vector<1x10xf32> to vector<2x10xf32>
    %19 = arith.addf %16, %18 : vector<2x10xf32>
    %cst_17 = arith.constant 0.000000e+00 : f32
    %20 = vector.broadcast %cst_17 : f32 to vector<2x10xf32>
    %21 = arith.maximumf %19, %20 : vector<2x10xf32>
    %c0_18 = arith.constant 0 : index
    %c0_19 = arith.constant 0 : index
    %22 = vector.load %arg8[%c0_18, %c0_19] : memref<2x10xf32, #tpu.memory_space<vmem>>, vector<2x10xf32>
    tpu.vector_store %arg8[%c0_18, %c0_19], %21 {strides = array<i32>} : memref<2x10xf32, #tpu.memory_space<vmem>>, vector<2x10xf32>,
    return
  }
  func.func @transform_0(%arg0: i32) -> (i32, i32) {
    %c0_i32 = arith.constant 0 : i32
    %c0_i32_0 = arith.constant 0 : i32
    return %arg0, %c0_i32 : i32, i32
  }
  func.func @transform_1(%arg0: i32) -> (i32, i32) {
    %c0_i32 = arith.constant 0 : i32
    %c0_i32_0 = arith.constant 0 : i32
    %c0_i32_1 = arith.constant 0 : i32
    return %c0_i32, %c0_i32_0 : i32, i32
  }
  func.func @transform_2(%arg0: i32) -> (i32, i32) {
    %c0_i32 = arith.constant 0 : i32
    %c0_i32_0 = arith.constant 0 : i32
    %c0_i32_1 = arith.constant 0 : i32
    return %c0_i32, %c0_i32_0 : i32, i32
  }
  func.func @transform_3(%arg0: i32) -> (i32, i32) {
    %c0_i32 = arith.constant 0 : i32
    %c0_i32_0 = arith.constant 0 : i32
    %c0_i32_1 = arith.constant 0 : i32
    return %c0_i32, %c0_i32_0 : i32, i32
  }
  func.func @transform_4(%arg0: i32) -> (i32, i32) {
    %c0_i32 = arith.constant 0 : i32
    %c0_i32_0 = arith.constant 0 : i32
    %c0_i32_1 = arith.constant 0 : i32
    return %c0_i32, %c0_i32_0 : i32, i32
  }
  func.func @transform_5(%arg0: i32) -> (i32, i32) {
    %c0_i32 = arith.constant 0 : i32
    %c0_i32_0 = arith.constant 0 : i32
    %c0_i32_1 = arith.constant 0 : i32
    return %c0_i32, %c0_i32_0 : i32, i32
  }
  func.func @transform_6(%arg0: i32) -> (i32, i32) {
    %c0_i32 = arith.constant 0 : i32
    %c0_i32_0 = arith.constant 0 : i32
    %c0_i32_1 = arith.constant 0 : i32
    return %c0_i32, %c0_i32_0 : i32, i32
  }
  func.func @transform_7(%arg0: i32) -> (i32, i32) {
    %c0_i32 = arith.constant 0 : i32
    %c0_i32_0 = arith.constant 0 : i32
    return %arg0, %c0_i32 : i32, i32
  }
}

</mosaic_0001>

<bundles_post_ra>
// kernel: net_forward.3
= control target key start
LH: loop header
LB: loop body
LE: loop exit
PB: predicated region body
PF: predicated region fallthrough
CT: control target
= control target key end

     0   :  { %s1112_s12 = smov 0   ;;  %s1114_s13 = smov 0   ;;  %s1467_s0 = inlined_call_operand.vmem [shape: f32[1352,9], index: 0, kind: input, shape index: {}]   ;;  %s1468_s1 = inlined_call_operand.vmem [shape: f32[9,10], index: 1, kind: input, shape index: {}]   ;;  %s1469_s2 = inlined_call_operand.vmem [shape: f32[1,10], index: 2, kind: input, shape index: {}]   ;;  %s1470_s3 = inlined_call_operand.vmem [shape: f32[1352,10], index: 3, kind: output, shape index: {}]  }
   0x1   :  { %s1116_s14 = smov 0  }
   0x2 LB: > { %s1125_s15 = sadd.s32 4294967295, %s1058_s14   ;;  %s1127_s16 = sadd.s32 1, %s1058_s14   ;;  %s1058_s14 = sphi %s1116_s14, %s1479_s14   ;;  %s1054_s13 = sphi %s1114_s13, %s1478_s13   ;;  %s1050_s12 = sphi %s1112_s12, %s1477_s12  }
   0x3   : > { %s85_s17 = ssub.s32 %s1058_s14, %s1127_s16  ;;  %s88_s18 = sadd.s32 1, %s1054_s13 }
   0x4   : > { %p86_p0 = scmp.eq.s32.totalorder %s85_s17, 0  ;;  %p98_p1 = scmp.ne.s32.totalorder %s1054_s13, %s1050_s12 }
   0x5   : > { %p99_p2 = scmp.eq.s32.totalorder %s1125_s15, 5  ;;  %p852_p3 = scmp.ge.s32.totalorder %s1058_s14, 1 }
   0x6   : > { %s1135_s19 = scalar_select %p86_p0, %s1054_s13, %s88_s18  }
   0x7   : > { %p1137_p4 = por %p99_p2, %p98_p1  ;;  %p146_p5 = scmp.lt.s32.totalorder %s1058_s14, 7 }
   0x9   : > { %p147_p6 = pnand %p852_p3, %p146_p5 }
   0xa   : > { %s1148_s25 = sshll.u32 (!%p147_p6), %s1125_s15, 5  ;;  %s170_s4 = sand.u32 (!%p147_p6), 1, %s1050_s12  }
   0xb   : > { %150 = sbr.rel (%p147_p6) target bundleno = 279 (0x117), region = 32  ;;  %p178_p7 = scmp.lt.s32.totalorder (!%p147_p6), %s1148_s25, 168 }
   0xc   : > { %s853_s7 = sshll.u32 (!%p147_p6), %s170_s4, 8 }
   0xd   : > { %s1229_s8 = scalar_lea.vmem (!%p147_p6), [#allocation2], %s853_s7  }
  0x10   : > { %v225_v0 = vld [vmem:[%s1468_s1 + $0x8] sm:$0x1]  ;;  %vm327_vm0 = vcmask 1040384   ;;  %v224_v1 = vld [vmem:[%s1468_s1] sm:$0xff]  ;;  %s179_s26 = scalar_select %p178_p7, %s1148_s25, 168  ;;  %vm230_vm1 = vcmask 72704  }
  0x11   : > { %910 = vmatpush.msk.msra.mxu2 %vm327_vm0, %v225_v0  ;;  %911 = vmatpush.msk.msra.mxu3 %vm327_vm0, %v225_v0  ;;  %v1225_v34 = vld [vmem:[%s1469_s2] ss:$0 sm:$0xff]  ;;  %vm476_vm2 = vcmask 80896   ;;  %s517_s9 = ssub.s32 (%p1137_p4), 169, %s1148_s25  ;;  %s906_s10 = sshll.u32 (%p1137_p4), %s1125_s15, 8 }
  0x12   : > { %856 = vmatpush.msk.msra.mxu0 %vm327_vm0, %v225_v0  ;;  %909 = vmatpush.msk.msra.mxu1 %vm327_vm0, %v225_v0  ;;  %s855_s27 = sshll.u32 %s179_s26, 3  ;;  %p518_p8 = scmp.lt.s32.totalorder (%p1137_p4), %s517_s9, 32 }
  0x13   : > { %913 = vmatpush.msra.mxu2 %v224_v1  ;;  %914 = vmatpush.msra.mxu3 %v224_v1  ;;  %s1155_s30 = scalar_lea.vmem %s1467_s0, %s855_s27  ;;  %s1332_s14 = scalar_lea.vmem (%p1137_p4), %s1470_s3, %s906_s10  }
  0x14   : > { %346 = vmatpush.msra.mxu0 %v224_v1  ;;  %912 = vmatpush.msra.mxu1 %v224_v1  ;;  %v208_v2 = vld [vmem:[%s1155_s30 + $0x80] sm:$0xff]  ;;  %v209_v6 = vld [vmem:[%s1155_s30 + $0x88] sm:$0xff]  ;;  %v210_v10 = vld [vmem:[%s1155_s30 + $0x90] sm:$0xff] }
  0x15   : > { %v216_v3 = vld [vmem:[%s1155_s30 + $0xc0] sm:$0xff]  ;;  %873 = vmatmul.msk.f32.vlgmr.msra.gmra.mxu2 %vm230_vm1, %v208_v2  ;;  %v217_v7 = vld [vmem:[%s1155_s30 + $0xc8] sm:$0xff]  ;;  %v218_v11 = vld [vmem:[%s1155_s30 + $0xd0] sm:$0xff] }
  0x16   : > { %v192_v4 = vld [vmem:[%s1155_s30] sm:$0xff]  ;;  %881 = vmatmul.msk.f32.vlgmr.msra.gmra.mxu3 %vm230_vm1, %v216_v3  ;;  %v193_v8 = vld [vmem:[%s1155_s30 + $0x8] sm:$0xff]  ;;  %v194_v12 = vld [vmem:[%s1155_s30 + $0x10] sm:$0xff] }
  0x17   : > { %v200_v5 = vld [vmem:[%s1155_s30 + $0x40] sm:$0xff]  ;;  %857 = vmatmul.msk.f32.vlgmr.msra.gmra.mxu0 %vm230_vm1, %v192_v4  ;;  %v201_v9 = vld [vmem:[%s1155_s30 + $0x48] sm:$0xff]  ;;  %v202_v13 = vld [vmem:[%s1155_s30 + $0x50] sm:$0xff] }
  0x18   : > { %865 = vmatmul.msk.f32.vlgmr.msra.gmra.mxu1 %vm230_vm1, %v200_v5  ;;  %v211_v14 = vld [vmem:[%s1155_s30 + $0x98] sm:$0xff]  ;;  %v212_v18 = vld [vmem:[%s1155_s30 + $0xa0] sm:$0xff]  ;;  %v213_v22 = vld [vmem:[%s1155_s30 + $0xa8] sm:$0xff] }
  0x19   : > { %v219_v15 = vld [vmem:[%s1155_s30 + $0xd8] sm:$0xff]  ;;  %v220_v19 = vld [vmem:[%s1155_s30 + $0xe0] sm:$0xff]  ;;  %v221_v23 = vld [vmem:[%s1155_s30 + $0xe8] sm:$0xff] }
  0x1a   : > { %v195_v16 = vld [vmem:[%s1155_s30 + $0x18] sm:$0xff]  ;;  %v196_v20 = vld [vmem:[%s1155_s30 + $0x20] sm:$0xff]  ;;  %v197_v24 = vld [vmem:[%s1155_s30 + $0x28] sm:$0xff] }
  0x1b   : > { %v203_v17 = vld [vmem:[%s1155_s30 + $0x58] sm:$0xff]  ;;  %v204_v21 = vld [vmem:[%s1155_s30 + $0x60] sm:$0xff]  ;;  %v205_v25 = vld [vmem:[%s1155_s30 + $0x68] sm:$0xff] }
  0x1c   : > { %v214_v26 = vld [vmem:[%s1155_s30 + $0xb0] sm:$0xff]  ;;  %v215_v30 = vld [vmem:[%s1155_s30 + $0xb8] sm:$0xff] }
  0x1d   : > { %874 = vmatmul.msk.f32.gmra.mxu2 %vm230_vm1, %v209_v6  ;;  %v222_v27 = vld [vmem:[%s1155_s30 + $0xf0] sm:$0xff]  ;;  %v223_v31 = vld [vmem:[%s1155_s30 + $0xf8] sm:$0xff] }
  0x1e   : > { %882 = vmatmul.msk.f32.gmra.mxu3 %vm230_vm1, %v217_v7  ;;  %v198_v28 = vld [vmem:[%s1155_s30 + $0x30] sm:$0xff]  ;;  %v199_v32 = vld [vmem:[%s1155_s30 + $0x38] sm:$0xff] }
  0x1f   : > { %858 = vmatmul.msk.f32.gmra.mxu0 %vm230_vm1, %v193_v8  ;;  %v206_v29 = vld [vmem:[%s1155_s30 + $0x70] sm:$0xff]  ;;  %v207_v33 = vld [vmem:[%s1155_s30 + $0x78] sm:$0xff] }
  0x20   : > { %866 = vmatmul.msk.f32.gmra.mxu1 %vm230_vm1, %v201_v9 }
  0x25   : > { %875 = vmatmul.msk.f32.gmra.mxu2 %vm230_vm1, %v210_v10 }
  0x26   : > { %883 = vmatmul.msk.f32.gmra.mxu3 %vm230_vm1, %v218_v11 }
  0x27   : > { %859 = vmatmul.msk.f32.gmra.mxu0 %vm230_vm1, %v194_v12 }
  0x28   : > { %867 = vmatmul.msk.f32.gmra.mxu1 %vm230_vm1, %v202_v13 }
  0x2d   : > { %876 = vmatmul.msk.f32.gmra.mxu2 %vm230_vm1, %v211_v14 }
  0x2e   : > { %884 = vmatmul.msk.f32.gmra.mxu3 %vm230_vm1, %v219_v15 }
  0x2f   : > { %860 = vmatmul.msk.f32.gmra.mxu0 %vm230_vm1, %v195_v16 }
  0x30   : > { %868 = vmatmul.msk.f32.gmra.mxu1 %vm230_vm1, %v203_v17 }
  0x35   : > { %877 = vmatmul.msk.f32.gmra.mxu2 %vm230_vm1, %v212_v18 }
  0x36   : > { %885 = vmatmul.msk.f32.gmra.mxu3 %vm230_vm1, %v220_v19 }
  0x37   : > { %861 = vmatmul.msk.f32.gmra.mxu0 %vm230_vm1, %v196_v20 }
  0x38   : > { %869 = vmatmul.msk.f32.gmra.mxu1 %vm230_vm1, %v204_v21 }
  0x3d   : > { %878 = vmatmul.msk.f32.gmra.mxu2 %vm230_vm1, %v213_v22 }
  0x3e   : > { %886 = vmatmul.msk.f32.gmra.mxu3 %vm230_vm1, %v221_v23 }
  0x3f   : > { %862 = vmatmul.msk.f32.gmra.mxu0 %vm230_vm1, %v197_v24 }
  0x40   : > { %870 = vmatmul.msk.f32.gmra.mxu1 %vm230_vm1, %v205_v25 }
  0x45   : > { %879 = vmatmul.msk.f32.gmra.mxu2 %vm230_vm1, %v214_v26 }
  0x46   : > { %887 = vmatmul.msk.f32.gmra.mxu3 %vm230_vm1, %v222_v27 }
  0x47   : > { %863 = vmatmul.msk.f32.gmra.mxu0 %vm230_vm1, %v198_v28 }
  0x48   : > { %871 = vmatmul.msk.f32.gmra.mxu1 %vm230_vm1, %v206_v29 }
  0x4d   : > { %880 = vmatmul.msk.f32.gmra.mxu2 %vm230_vm1, %v215_v30 }
  0x4e   : > { %888 = vmatmul.msk.f32.gmra.mxu3 %vm230_vm1, %v223_v31 }
  0x4f   : > { %864 = vmatmul.msk.f32.gmra.mxu0 %vm230_vm1, %v199_v32 }
  0x50   : > { %872 = vmatmul.msk.f32.gmra.mxu1 %vm230_vm1, %v207_v33 }
  0x94   : > { %v348_v35 = vpop.f32.mrf.mxu0 }
  0x95   : > { %v372_v36 = vpop.f32.mrf.mxu1  ;;  %v349_v37 = vadd.f32 %v1225_v34, %v348_v35 }
  0x96   : > { %v373_v38 = vadd.f32 %v1225_v34, %v372_v36 }
  0x97   : > { %v444_v39 = vmax.f32 %v349_v37, 0.0 }
  0x98   : > { %v452_v40 = vmax.f32 %v373_v38, 0.0  ;;  %v396_v41 = vpop.f32.mrf.mxu2 }
  0x99   : > { %477 = vst.msk [vmem:[%s1229_s8] sm:$0xff] %vm476_vm2, %v444_v39  ;;  %v420_v42 = vpop.f32.mrf.mxu3  ;;  %v397_v43 = vadd.f32 %v1225_v34, %v396_v41 }
  0x9a   : > { %485 = vst.msk [vmem:[%s1229_s8 + $0x40] sm:$0xff] %vm476_vm2, %v452_v40  ;;  %v421_v44 = vadd.f32 %v1225_v34, %v420_v42 }
  0x9b   : > { %v460_v45 = vmax.f32 %v397_v43, 0.0 }
  0x9c   : > { %v468_v46 = vmax.f32 %v421_v44, 0.0  ;;  %v351_v47 = vpop.f32.mrf.mxu0 }
  0x9d   : > { %v375_v48 = vpop.f32.mrf.mxu1  ;;  %v352_v49 = vadd.f32 %v1225_v34, %v351_v47  ;;  %493 = vst.msk [vmem:[%s1229_s8 + $0x80] sm:$0xff] %vm476_vm2, %v460_v45 }
  0x9e   : > { %v376_v50 = vadd.f32 %v1225_v34, %v375_v48  ;;  %501 = vst.msk [vmem:[%s1229_s8 + $0xc0] sm:$0xff] %vm476_vm2, %v468_v46 }
  0x9f   : > { %v445_v51 = vmax.f32 %v352_v49, 0.0 }
  0xa0   : > { %v453_v52 = vmax.f32 %v376_v50, 0.0  ;;  %v399_v53 = vpop.f32.mrf.mxu2 }
  0xa1   : > { %478 = vst.msk [vmem:[%s1229_s8 + $0x8] sm:$0xff] %vm476_vm2, %v445_v51  ;;  %v423_v54 = vpop.f32.mrf.mxu3  ;;  %v400_v55 = vadd.f32 %v1225_v34, %v399_v53 }
  0xa2   : > { %486 = vst.msk [vmem:[%s1229_s8 + $0x48] sm:$0xff] %vm476_vm2, %v453_v52  ;;  %v424_v56 = vadd.f32 %v1225_v34, %v423_v54 }
  0xa3   : > { %v461_v57 = vmax.f32 %v400_v55, 0.0 }
  0xa4   : > { %v469_v58 = vmax.f32 %v424_v56, 0.0  ;;  %v354_v59 = vpop.f32.mrf.mxu0 }
  0xa5   : > { %v378_v60 = vpop.f32.mrf.mxu1  ;;  %v355_v61 = vadd.f32 %v1225_v34, %v354_v59  ;;  %494 = vst.msk [vmem:[%s1229_s8 + $0x88] sm:$0xff] %vm476_vm2, %v461_v57 }
  0xa6   : > { %v379_v62 = vadd.f32 %v1225_v34, %v378_v60  ;;  %502 = vst.msk [vmem:[%s1229_s8 + $0xc8] sm:$0xff] %vm476_vm2, %v469_v58 }
  0xa7   : > { %v446_v63 = vmax.f32 %v355_v61, 0.0 }
  0xa8   : > { %v454_v0 = vmax.f32 %v379_v62, 0.0  ;;  %v402_v1 = vpop.f32.mrf.mxu2 }
  0xa9   : > { %479 = vst.msk [vmem:[%s1229_s8 + $0x10] sm:$0xff] %vm476_vm2, %v446_v63  ;;  %v426_v2 = vpop.f32.mrf.mxu3  ;;  %v403_v3 = vadd.f32 %v1225_v34, %v402_v1 }
  0xaa   : > { %487 = vst.msk [vmem:[%s1229_s8 + $0x50] sm:$0xff] %vm476_vm2, %v454_v0  ;;  %v427_v4 = vadd.f32 %v1225_v34, %v426_v2 }
  0xab   : > { %v462_v5 = vmax.f32 %v403_v3, 0.0 }
  0xac   : > { %v470_v6 = vmax.f32 %v427_v4, 0.0  ;;  %v357_v7 = vpop.f32.mrf.mxu0 }
  0xad   : > { %v381_v8 = vpop.f32.mrf.mxu1  ;;  %v358_v9 = vadd.f32 %v1225_v34, %v357_v7  ;;  %495 = vst.msk [vmem:[%s1229_s8 + $0x90] sm:$0xff] %vm476_vm2, %v462_v5 }
  0xae   : > { %v382_v10 = vadd.f32 %v1225_v34, %v381_v8  ;;  %503 = vst.msk [vmem:[%s1229_s8 + $0xd0] sm:$0xff] %vm476_vm2, %v470_v6 }
  0xaf   : > { %v447_v11 = vmax.f32 %v358_v9, 0.0 }
  0xb0   : > { %v455_v12 = vmax.f32 %v382_v10, 0.0  ;;  %v405_v13 = vpop.f32.mrf.mxu2 }
  0xb1   : > { %480 = vst.msk [vmem:[%s1229_s8 + $0x18] sm:$0xff] %vm476_vm2, %v447_v11  ;;  %v429_v14 = vpop.f32.mrf.mxu3  ;;  %v406_v15 = vadd.f32 %v1225_v34, %v405_v13 }
  0xb2   : > { %488 = vst.msk [vmem:[%s1229_s8 + $0x58] sm:$0xff] %vm476_vm2, %v455_v12  ;;  %v430_v16 = vadd.f32 %v1225_v34, %v429_v14 }
  0xb3   : > { %v463_v17 = vmax.f32 %v406_v15, 0.0 }
  0xb4   : > { %v471_v18 = vmax.f32 %v430_v16, 0.0  ;;  %v360_v19 = vpop.f32.mrf.mxu0 }
  0xb5   : > { %v384_v20 = vpop.f32.mrf.mxu1  ;;  %v361_v21 = vadd.f32 %v1225_v34, %v360_v19  ;;  %496 = vst.msk [vmem:[%s1229_s8 + $0x98] sm:$0xff] %vm476_vm2, %v463_v17 }
  0xb6   : > { %v385_v22 = vadd.f32 %v1225_v34, %v384_v20  ;;  %504 = vst.msk [vmem:[%s1229_s8 + $0xd8] sm:$0xff] %vm476_vm2, %v471_v18 }
  0xb7   : > { %v448_v23 = vmax.f32 %v361_v21, 0.0 }
  0xb8   : > { %v456_v24 = vmax.f32 %v385_v22, 0.0  ;;  %v408_v25 = vpop.f32.mrf.mxu2 }
  0xb9   : > { %481 = vst.msk [vmem:[%s1229_s8 + $0x20] sm:$0xff] %vm476_vm2, %v448_v23  ;;  %v432_v26 = vpop.f32.mrf.mxu3  ;;  %v409_v27 = vadd.f32 %v1225_v34, %v408_v25 }
  0xba   : > { %489 = vst.msk [vmem:[%s1229_s8 + $0x60] sm:$0xff] %vm476_vm2, %v456_v24  ;;  %v433_v28 = vadd.f32 %v1225_v34, %v432_v26 }
  0xbb   : > { %v464_v29 = vmax.f32 %v409_v27, 0.0 }
  0xbc   : > { %v472_v30 = vmax.f32 %v433_v28, 0.0  ;;  %v363_v31 = vpop.f32.mrf.mxu0 }
  0xbd   : > { %v387_v32 = vpop.f32.mrf.mxu1  ;;  %v364_v33 = vadd.f32 %v1225_v34, %v363_v31  ;;  %497 = vst.msk [vmem:[%s1229_s8 + $0xa0] sm:$0xff] %vm476_vm2, %v464_v29 }
  0xbe   : > { %v388_v35 = vadd.f32 %v1225_v34, %v387_v32  ;;  %505 = vst.msk [vmem:[%s1229_s8 + $0xe0] sm:$0xff] %vm476_vm2, %v472_v30 }
  0xbf   : > { %v449_v36 = vmax.f32 %v364_v33, 0.0 }
  0xc0   : > { %v457_v37 = vmax.f32 %v388_v35, 0.0  ;;  %v411_v38 = vpop.f32.mrf.mxu2 }
  0xc1   : > { %482 = vst.msk [vmem:[%s1229_s8 + $0x28] sm:$0xff] %vm476_vm2, %v449_v36  ;;  %v435_v39 = vpop.f32.mrf.mxu3  ;;  %v412_v40 = vadd.f32 %v1225_v34, %v411_v38 }
  0xc2   : > { %490 = vst.msk [vmem:[%s1229_s8 + $0x68] sm:$0xff] %vm476_vm2, %v457_v37  ;;  %v436_v41 = vadd.f32 %v1225_v34, %v435_v39 }
  0xc3   : > { %v465_v42 = vmax.f32 %v412_v40, 0.0 }
  0xc4   : > { %v473_v43 = vmax.f32 %v436_v41, 0.0  ;;  %v366_v44 = vpop.f32.mrf.mxu0 }
  0xc5   : > { %v390_v45 = vpop.f32.mrf.mxu1  ;;  %v367_v46 = vadd.f32 %v1225_v34, %v366_v44  ;;  %498 = vst.msk [vmem:[%s1229_s8 + $0xa8] sm:$0xff] %vm476_vm2, %v465_v42 }
  0xc6   : > { %v391_v47 = vadd.f32 %v1225_v34, %v390_v45  ;;  %506 = vst.msk [vmem:[%s1229_s8 + $0xe8] sm:$0xff] %vm476_vm2, %v473_v43 }
  0xc7   : > { %v450_v48 = vmax.f32 %v367_v46, 0.0 }
  0xc8   : > { %v458_v49 = vmax.f32 %v391_v47, 0.0  ;;  %v414_v50 = vpop.f32.mrf.mxu2 }
  0xc9   : > { %483 = vst.msk [vmem:[%s1229_s8 + $0x30] sm:$0xff] %vm476_vm2, %v450_v48  ;;  %v438_v51 = vpop.f32.mrf.mxu3  ;;  %v415_v52 = vadd.f32 %v1225_v34, %v414_v50 }
  0xca   : > { %491 = vst.msk [vmem:[%s1229_s8 + $0x70] sm:$0xff] %vm476_vm2, %v458_v49  ;;  %v439_v53 = vadd.f32 %v1225_v34, %v438_v51 }
  0xcb   : > { %v466_v54 = vmax.f32 %v415_v52, 0.0 }
  0xcc   : > { %v474_v55 = vmax.f32 %v439_v53, 0.0  ;;  %v369_v56 = vpop.f32.mrf.mxu0 }
  0xcd   : > { %v393_v57 = vpop.f32.mrf.mxu1  ;;  %v370_v58 = vadd.f32 %v1225_v34, %v369_v56  ;;  %499 = vst.msk [vmem:[%s1229_s8 + $0xb0] sm:$0xff] %vm476_vm2, %v466_v54 }
  0xce   : > { %v394_v59 = vadd.f32 %v1225_v34, %v393_v57  ;;  %507 = vst.msk [vmem:[%s1229_s8 + $0xf0] sm:$0xff] %vm476_vm2, %v474_v55 }
  0xcf   : > { %v451_v60 = vmax.f32 %v370_v58, 0.0 }
  0xd0   : > { %v459_v61 = vmax.f32 %v394_v59, 0.0  ;;  %v417_v62 = vpop.f32.mrf.mxu2 }
  0xd1   : > { %484 = vst.msk [vmem:[%s1229_s8 + $0x38] sm:$0xff] %vm476_vm2, %v451_v60  ;;  %v441_v63 = vpop.f32.mrf.mxu3  ;;  %v418_v0 = vadd.f32 %v1225_v34, %v417_v62 }
  0xd2   : > { %492 = vst.msk [vmem:[%s1229_s8 + $0x78] sm:$0xff] %vm476_vm2, %v459_v61  ;;  %v442_v1 = vadd.f32 %v1225_v34, %v441_v63  ;;  %515 = sbr.rel (!%p1137_p4) target bundleno = 279 (0x117), region = 36 }
  0xd3   : > { %v467_v2 = vmax.f32 %v418_v0, 0.0 }
  0xd4   : > { %v475_v3 = vmax.f32 %v442_v1, 0.0 }
  0xd5   : > { %500 = vst.msk [vmem:[%s1229_s8 + $0xb8] sm:$0xff] %vm476_vm2, %v467_v2 }
  0xd6   : > { %508 = vst.msk [vmem:[%s1229_s8 + $0xf8] sm:$0xff] %vm476_vm2, %v475_v3 }
  0xd7   : > { %s1481_s9 = smov (!%p518_p8, %s517_s9), 32 }
  0xd8   : > { %s891_s17 = sshll.u32 %s1481_s9, 3 }
  0xd9   : > { %p894_p9 = scmp.eq.s32.totalorder %s891_s17, 0 }
  0xda   : > { %s1338_s18 = sshrl.u32 (!%p894_p9), %s1481_s9, 5 }
  0xdb   : > { %526 = sbr.rel (%p894_p9) target bundleno = 279 (0x117), region = 40  ;;  %p895_p10 = scmp.le.s32.totalorder (!%p894_p9), %s1338_s18, 0 }
  0xe0   : > { %805 = sbr.rel (%p895_p10) target bundleno = 262 (0x106), region = 116  ;;  %s1472_s15 = smov (!%p895_p10), %s1332_s14 }
  0xe1   : > { %s1473_s20 = smov (!%p895_p10), %s1229_s8  ;;  %s1347_s21 = smov (!%p895_p10), 0  }
  0xe2   : > { %s1349_s22 = smov (!%p895_p10), 0  }
  0xe5 LB: >> { %v651_v34 = vld [vmem:[%s1066_s20] sm:$0xff]  ;;  %v653_v4 = vld [vmem:[%s1066_s20 + $0x8] sm:$0xff]  ;;  %v655_v5 = vld [vmem:[%s1066_s20 + $0x10] sm:$0xff]  ;;  %s715_s23 = sadd.s32 1, %s1070_s21  ;;  %s645_s22 = sadd.s32 1, %s1074_s22   ;;  %s1074_s22 = sphi %s1349_s22, %s645_s22   ;;  %s1070_s21 = sphi %s1347_s21, %s1476_s21   ;;  %s1066_s20 = sphi %s1473_s20, %s1475_s20   ;;  %s1062_s15 = sphi %s1472_s15, %s1474_s15  }
  0xe6   : >> { %652 = vst [vmem:[%s1062_s15] sm:$0xff] %v651_v34  ;;  %v657_v6 = vld [vmem:[%s1066_s20 + $0x18] sm:$0xff]  ;;  %p716_p11 = scmp.ge.s32.totalorder %s715_s23, %s1338_s18  ;;  %v659_v7 = vld [vmem:[%s1066_s20 + $0x20] sm:$0xff]  ;;  %v661_v8 = vld [vmem:[%s1066_s20 + $0x28] sm:$0xff]  ;;  %p644_p12 = scmp.ge.s32.totalorder %s645_s22, %s1338_s18 }
  0xe7   : >> { %654 = vst [vmem:[%s1062_s15 + $0x8] sm:$0xff] %v653_v4  ;;  %v663_v9 = vld [vmem:[%s1066_s20 + $0x30] sm:$0xff]  ;;  %v665_v10 = vld [vmem:[%s1066_s20 + $0x38] sm:$0xff]  ;;  %v667_v11 = vld [vmem:[%s1066_s20 + $0x40] sm:$0xff] }
  0xe8   : >> { %656 = vst [vmem:[%s1062_s15 + $0x10] sm:$0xff] %v655_v5  ;;  %s1483_s23 = smov (%p716_p11, %s715_s23), 0  ;;  %v669_v12 = vld [vmem:[%s1066_s20 + $0x48] sm:$0xff]  ;;  %v671_v13 = vld [vmem:[%s1066_s20 + $0x50] sm:$0xff]  ;;  %v673_v14 = vld [vmem:[%s1066_s20 + $0x58] sm:$0xff] }
  0xe9   : >> { %658 = vst [vmem:[%s1062_s15 + $0x18] sm:$0xff] %v657_v6  ;;  %s896_s24 = sshll.u32 %s1483_s23, 8  ;;  %v675_v15 = vld [vmem:[%s1066_s20 + $0x60] sm:$0xff]  ;;  %v677_v16 = vld [vmem:[%s1066_s20 + $0x68] sm:$0xff]  ;;  %v679_v17 = vld [vmem:[%s1066_s20 + $0x70] sm:$0xff]  ;;  %s1476_s21 = smov %s1483_s23 }
  0xea   : >> { %660 = vst [vmem:[%s1062_s15 + $0x20] sm:$0xff] %v659_v7  ;;  %s1381_s25 = scalar_lea.vmem %s1229_s8, %s896_s24 [#allocation2]   ;;  %s1384_s26 = scalar_lea.vmem %s1332_s14, %s896_s24   ;;  %v681_v18 = vld [vmem:[%s1066_s20 + $0x78] sm:$0xff]  ;;  %v683_v19 = vld [vmem:[%s1066_s20 + $0x80] sm:$0xff]  ;;  %v685_v20 = vld [vmem:[%s1066_s20 + $0x88] sm:$0xff] }
  0xeb   : >> { %662 = vst [vmem:[%s1062_s15 + $0x28] sm:$0xff] %v661_v8  ;;  %v687_v21 = vld [vmem:[%s1066_s20 + $0x90] sm:$0xff]  ;;  %v689_v22 = vld [vmem:[%s1066_s20 + $0x98] sm:$0xff]  ;;  %v691_v23 = vld [vmem:[%s1066_s20 + $0xa0] sm:$0xff] }
  0xec   : >> { %664 = vst [vmem:[%s1062_s15 + $0x30] sm:$0xff] %v663_v9  ;;  %v693_v24 = vld [vmem:[%s1066_s20 + $0xa8] sm:$0xff]  ;;  %v695_v25 = vld [vmem:[%s1066_s20 + $0xb0] sm:$0xff]  ;;  %v697_v26 = vld [vmem:[%s1066_s20 + $0xb8] sm:$0xff] }
  0xed   : >> { %666 = vst [vmem:[%s1062_s15 + $0x38] sm:$0xff] %v665_v10  ;;  %v699_v27 = vld [vmem:[%s1066_s20 + $0xc0] sm:$0xff]  ;;  %v701_v28 = vld [vmem:[%s1066_s20 + $0xc8] sm:$0xff]  ;;  %v703_v29 = vld [vmem:[%s1066_s20 + $0xd0] sm:$0xff] }
  0xee   : >> { %668 = vst [vmem:[%s1062_s15 + $0x40] sm:$0xff] %v667_v11  ;;  %v705_v30 = vld [vmem:[%s1066_s20 + $0xd8] sm:$0xff]  ;;  %v707_v31 = vld [vmem:[%s1066_s20 + $0xe0] sm:$0xff]  ;;  %v709_v32 = vld [vmem:[%s1066_s20 + $0xe8] sm:$0xff] }
  0xef   : >> { %670 = vst [vmem:[%s1062_s15 + $0x48] sm:$0xff] %v669_v12  ;;  %v711_v33 = vld [vmem:[%s1066_s20 + $0xf0] sm:$0xff]  ;;  %v713_v35 = vld [vmem:[%s1066_s20 + $0xf8] sm:$0xff]  ;;  %s1475_s20 = smov %s1381_s25 }
  0xf0   : >> { %672 = vst [vmem:[%s1062_s15 + $0x50] sm:$0xff] %v671_v13 }
  0xf1   : >> { %674 = vst [vmem:[%s1062_s15 + $0x58] sm:$0xff] %v673_v14 }
  0xf2   : >> { %676 = vst [vmem:[%s1062_s15 + $0x60] sm:$0xff] %v675_v15 }
  0xf3   : >> { %678 = vst [vmem:[%s1062_s15 + $0x68] sm:$0xff] %v677_v16 }
  0xf4   : >> { %680 = vst [vmem:[%s1062_s15 + $0x70] sm:$0xff] %v679_v17 }
  0xf5   : >> { %682 = vst [vmem:[%s1062_s15 + $0x78] sm:$0xff] %v681_v18 }
  0xf6   : >> { %684 = vst [vmem:[%s1062_s15 + $0x80] sm:$0xff] %v683_v19 }
  0xf7   : >> { %686 = vst [vmem:[%s1062_s15 + $0x88] sm:$0xff] %v685_v20 }
  0xf8   : >> { %688 = vst [vmem:[%s1062_s15 + $0x90] sm:$0xff] %v687_v21 }
  0xf9   : >> { %690 = vst [vmem:[%s1062_s15 + $0x98] sm:$0xff] %v689_v22 }
  0xfa   : >> { %692 = vst [vmem:[%s1062_s15 + $0xa0] sm:$0xff] %v691_v23 }
  0xfb   : >> { %694 = vst [vmem:[%s1062_s15 + $0xa8] sm:$0xff] %v693_v24 }
  0xfc   : >> { %696 = vst [vmem:[%s1062_s15 + $0xb0] sm:$0xff] %v695_v25 }
  0xfd   : >> { %698 = vst [vmem:[%s1062_s15 + $0xb8] sm:$0xff] %v697_v26 }
  0xfe   : >> { %700 = vst [vmem:[%s1062_s15 + $0xc0] sm:$0xff] %v699_v27 }
  0xff   : >> { %702 = vst [vmem:[%s1062_s15 + $0xc8] sm:$0xff] %v701_v28 }
 0x100   : >> { %704 = vst [vmem:[%s1062_s15 + $0xd0] sm:$0xff] %v703_v29 }
 0x101   : >> { %706 = vst [vmem:[%s1062_s15 + $0xd8] sm:$0xff] %v705_v30  ;;  %647 = sbr.rel (!%p644_p12) target bundleno = 229 (0xe5), region = 122 }
 0x102   : >> { %708 = vst [vmem:[%s1062_s15 + $0xe0] sm:$0xff] %v707_v31 }
 0x103   : >> { %710 = vst [vmem:[%s1062_s15 + $0xe8] sm:$0xff] %v709_v32 }
 0x104   : >> { %712 = vst [vmem:[%s1062_s15 + $0xf0] sm:$0xff] %v711_v33 }
 0x105   : >> { %714 = vst [vmem:[%s1062_s15 + $0xf8] sm:$0xff] %v713_v35  ;;  %s1474_s15 = smov %s1384_s26 }
 0x106 PF: > { %s1449_s27 = sand.u32 31, %s1481_s9   ;;  %s907_s28 = sshll.u32 %s1338_s18, 8 }
 0x107   : > { %s726_s29 = scalar_lea.vmem %s1229_s8, %s907_s28 [#allocation2]   ;;  %s728_s30 = scalar_lea.vmem %s1332_s14, %s907_s28  }
 0x108   : > { %p901_p13 = scmp.le.s32.totalorder %s1449_s27, 0 }
 0x109   : > { %s1076_s4 = smov (!%p901_p13), %s728_s30   ;;  %s1080_s5 = smov (!%p901_p13), %s726_s29  }
 0x10a   : > { %819 = sbr.rel (%p901_p13) target bundleno = 279 (0x117), region = 127  ;;  %s1084_s6 = smov (!%p901_p13), 0  }
 0x10b   : > { %s1088_s7 = smov (!%p901_p13), 0  }
 0x10f LB: >> { %v738_v36 = vld [vmem:[%s1082_s5] sm:$0xff]  ;;  %s740_s9 = sadd.s32 1, %s1086_s6  ;;  %s732_s7 = sadd.s32 1, %s1090_s7   ;;  %s1090_s7 = sphi %s1088_s7, %s732_s7   ;;  %s1086_s6 = sphi %s1084_s6, %s1085_s6   ;;  %s1082_s5 = sphi %s1080_s5, %s745_s5   ;;  %s1078_s4 = sphi %s1076_s4, %s746_s4  }
 0x110   : >> { %739 = vst [vmem:[%s1078_s4] sm:$0xff] %v738_v36  ;;  %p741_p0 = scmp.ge.s32.totalorder %s740_s9, %s1449_s27  ;;  %p731_p1 = scmp.ge.s32.totalorder %s732_s7, %s1449_s27 }
 0x112   : >> { %s1485_s9 = smov (%p741_p0, %s740_s9), 0  ;;  %734 = sbr.rel (!%p731_p1) target bundleno = 271 (0x10f), region = 133 }
 0x113   : >> { %s902_s8 = sshll.u32 %s1485_s9, 3  ;;  %s1085_s6 = smov %s1485_s9  }
 0x114   : >> { %s745_s5 = scalar_lea.vmem %s726_s29, %s902_s8 [#allocation2]   ;;  %s746_s4 = scalar_lea.vmem %s728_s30, %s902_s8  }
 0x117 PF: > { %p10_p2 = scmp.ge.s32.totalorder %s1127_s16, 8   ;;  %s1477_s12 = smov %s1054_s13 }
 0x118   : > { %s1478_s13 = smov %s1135_s19  ;;  %s1479_s14 = smov %s1127_s16 }
 0x119   :  { %12 = sbr.rel (!%p10_p2) target bundleno = 2 (0x2), region = 144 }

// kernel: net_forward.4
= control target key start
LH: loop header
LB: loop body
LE: loop exit
PB: predicated region body
PF: predicated region fallthrough
CT: control target
= control target key end

     0   :  { %vm155_vm0 = vcmask 1041408   ;;  %vm61_vm1 = vcmask 736256   ;;  %vm300_vm2 = vcmask 80896   ;;  %vm331_vm3 = vcmask 74752   ;;  %s745_s1 = inlined_call_operand.vmem [shape: f32[90,10], index: 1, kind: input, shape index: {}]   ;;  %s746_s2 = inlined_call_operand.vmem [shape: f32[1,10], index: 2, kind: input, shape index: {}]   ;;  %s747_s0 = inlined_call_operand.vmem [shape: f32[242,90], index: 0, kind: input, shape index: {}]   ;;  %s748_s3 = inlined_call_operand.vmem [shape: f32[242,10], index: 3, kind: output, shape index: {}]  }
   0x1   :  { %v56_v0 = vld [vmem:[%s745_s1 + $0x58] sm:$0x3]  ;;  %v55_v1 = vld [vmem:[%s745_s1 + $0x50] sm:$0xff]  ;;  %v54_v2 = vld [vmem:[%s745_s1 + $0x48] sm:$0xff] }
   0x2   :  { %370 = vmatpush.msk.msra.mxu2 %vm155_vm0, %v56_v0  ;;  %371 = vmatpush.msk.msra.mxu3 %vm155_vm0, %v56_v0  ;;  %v53_v3 = vld [vmem:[%s745_s1 + $0x40] sm:$0xff]  ;;  %v52_v4 = vld [vmem:[%s745_s1 + $0x38] sm:$0xff]  ;;  %v51_v5 = vld [vmem:[%s745_s1 + $0x30] sm:$0xff] }
   0x3   :  { %337 = vmatpush.msk.msra.mxu0 %vm155_vm0, %v56_v0  ;;  %369 = vmatpush.msk.msra.mxu1 %vm155_vm0, %v56_v0  ;;  %v50_v6 = vld [vmem:[%s745_s1 + $0x28] sm:$0xff]  ;;  %v49_v7 = vld [vmem:[%s745_s1 + $0x20] sm:$0xff]  ;;  %v48_v8 = vld [vmem:[%s745_s1 + $0x18] sm:$0xff] }
   0x4   :  { %373 = vmatpush.msra.mxu2 %v55_v1  ;;  %374 = vmatpush.msra.mxu3 %v55_v1  ;;  %v47_v9 = vld [vmem:[%s745_s1 + $0x10] sm:$0xff]  ;;  %v46_v10 = vld [vmem:[%s745_s1 + $0x8] sm:$0xff]  ;;  %v45_v11 = vld [vmem:[%s745_s1] sm:$0xff] }
   0x5   :  { %164 = vmatpush.msra.mxu0 %v55_v1  ;;  %372 = vmatpush.msra.mxu1 %v55_v1  ;;  %v29_v12 = vld [vmem:[%s747_s0 + $0x78] sm:$0xff]  ;;  %v14_v14 = vld [vmem:[%s747_s0] sm:$0xff]  ;;  %v15_v18 = vld [vmem:[%s747_s0 + $0x8] sm:$0xff] }
   0x6   :  { %376 = vmatpush.msra.mxu2 %v54_v2  ;;  %377 = vmatpush.msra.mxu3 %v54_v2  ;;  %v37_v13 = vld [vmem:[%s747_s0 + $0xb8] sm:$0xff]  ;;  %v22_v15 = vld [vmem:[%s747_s0 + $0x40] sm:$0xff]  ;;  %v23_v19 = vld [vmem:[%s747_s0 + $0x48] sm:$0xff] }
   0x7   :  { %165 = vmatpush.msra.mxu0 %v54_v2  ;;  %375 = vmatpush.msra.mxu1 %v54_v2  ;;  %v30_v16 = vld [vmem:[%s747_s0 + $0x80] sm:$0xff]  ;;  %v31_v20 = vld [vmem:[%s747_s0 + $0x88] sm:$0xff]  ;;  %v16_v22 = vld [vmem:[%s747_s0 + $0x10] sm:$0xff] }
   0x8   :  { %379 = vmatpush.msra.mxu2 %v53_v3  ;;  %380 = vmatpush.msra.mxu3 %v53_v3  ;;  %v38_v17 = vld [vmem:[%s747_s0 + $0xc0] sm:$0xff]  ;;  %v39_v21 = vld [vmem:[%s747_s0 + $0xc8] sm:$0xff]  ;;  %v24_v23 = vld [vmem:[%s747_s0 + $0x50] sm:$0xff] }
   0x9   :  { %166 = vmatpush.msra.mxu0 %v53_v3  ;;  %378 = vmatpush.msra.mxu1 %v53_v3  ;;  %v32_v24 = vld [vmem:[%s747_s0 + $0x90] sm:$0xff]  ;;  %v17_v26 = vld [vmem:[%s747_s0 + $0x18] sm:$0xff]  ;;  %v18_v30 = vld [vmem:[%s747_s0 + $0x20] sm:$0xff] }
   0xa   :  { %382 = vmatpush.msra.mxu2 %v52_v4  ;;  %383 = vmatpush.msra.mxu3 %v52_v4  ;;  %v40_v25 = vld [vmem:[%s747_s0 + $0xd0] sm:$0xff]  ;;  %v25_v27 = vld [vmem:[%s747_s0 + $0x58] sm:$0xff]  ;;  %v26_v31 = vld [vmem:[%s747_s0 + $0x60] sm:$0xff] }
   0xb   :  { %167 = vmatpush.msra.mxu0 %v52_v4  ;;  %381 = vmatpush.msra.mxu1 %v52_v4  ;;  %v33_v28 = vld [vmem:[%s747_s0 + $0x98] sm:$0xff]  ;;  %v34_v32 = vld [vmem:[%s747_s0 + $0xa0] sm:$0xff]  ;;  %v19_v34 = vld [vmem:[%s747_s0 + $0x28] sm:$0xff] }
   0xc   :  { %385 = vmatpush.msra.mxu2 %v51_v5  ;;  %386 = vmatpush.msra.mxu3 %v51_v5  ;;  %v41_v29 = vld [vmem:[%s747_s0 + $0xd8] sm:$0xff]  ;;  %v42_v33 = vld [vmem:[%s747_s0 + $0xe0] sm:$0xff]  ;;  %v27_v35 = vld [vmem:[%s747_s0 + $0x68] sm:$0xff] }
   0xd   :  { %168 = vmatpush.msra.mxu0 %v51_v5  ;;  %384 = vmatpush.msra.mxu1 %v51_v5  ;;  %v35_v36 = vld [vmem:[%s747_s0 + $0xa8] sm:$0xff]  ;;  %v20_v38 = vld [vmem:[%s747_s0 + $0x30] sm:$0xff]  ;;  %v21_v42 = vld [vmem:[%s747_s0 + $0x38] sm:$0xff] }
   0xe   :  { %388 = vmatpush.msra.mxu2 %v50_v6  ;;  %389 = vmatpush.msra.mxu3 %v50_v6  ;;  %v43_v37 = vld [vmem:[%s747_s0 + $0xe8] sm:$0xff]  ;;  %v28_v39 = vld [vmem:[%s747_s0 + $0x70] sm:$0xff]  ;;  %v589_v43 = vld [vmem:[%s746_s2] ss:$0 sm:$0xff] }
   0xf   :  { %169 = vmatpush.msra.mxu0 %v50_v6  ;;  %387 = vmatpush.msra.mxu1 %v50_v6  ;;  %v36_v40 = vld [vmem:[%s747_s0 + $0xb0] sm:$0xff] }
  0x10   :  { %391 = vmatpush.msra.mxu2 %v49_v7  ;;  %392 = vmatpush.msra.mxu3 %v49_v7  ;;  %v44_v41 = vld [vmem:[%s747_s0 + $0xf0] sm:$0x3] }
  0x11   :  { %170 = vmatpush.msra.mxu0 %v49_v7  ;;  %390 = vmatpush.msra.mxu1 %v49_v7 }
  0x12   :  { %394 = vmatpush.msra.mxu2 %v48_v8  ;;  %395 = vmatpush.msra.mxu3 %v48_v8 }
  0x13   :  { %171 = vmatpush.msra.mxu0 %v48_v8  ;;  %393 = vmatpush.msra.mxu1 %v48_v8 }
  0x14   :  { %397 = vmatpush.msra.mxu2 %v47_v9  ;;  %398 = vmatpush.msra.mxu3 %v47_v9 }
  0x15   :  { %172 = vmatpush.msra.mxu0 %v47_v9  ;;  %396 = vmatpush.msra.mxu1 %v47_v9 }
  0x16   :  { %400 = vmatpush.msra.mxu2 %v46_v10  ;;  %401 = vmatpush.msra.mxu3 %v46_v10 }
  0x17   :  { %173 = vmatpush.msra.mxu0 %v46_v10  ;;  %399 = vmatpush.msra.mxu1 %v46_v10 }
  0x18   :  { %403 = vmatpush.msra.mxu2 %v45_v11  ;;  %404 = vmatpush.msra.mxu3 %v45_v11 }
  0x19   :  { %353 = vmatmul.msk.f32.vlgmr.msra.gmra.mxu2 %vm61_vm1, %v29_v12  ;;  %361 = vmatmul.msk.f32.vlgmr.msra.gmra.mxu3 %vm61_vm1, %v37_v13 }
  0x1a   :  { %174 = vmatpush.msra.mxu0 %v45_v11  ;;  %402 = vmatpush.msra.mxu1 %v45_v11 }
  0x1b   :  { %338 = vmatmul.msk.f32.vlgmr.msra.gmra.mxu0 %vm61_vm1, %v14_v14  ;;  %346 = vmatmul.msk.f32.vlgmr.msra.gmra.mxu1 %vm61_vm1, %v22_v15 }
  0x21   :  { %354 = vmatmul.msk.f32.gmra.mxu2 %vm61_vm1, %v30_v16  ;;  %362 = vmatmul.msk.f32.gmra.mxu3 %vm61_vm1, %v38_v17 }
  0x23   :  { %339 = vmatmul.msk.f32.gmra.mxu0 %vm61_vm1, %v15_v18  ;;  %347 = vmatmul.msk.f32.gmra.mxu1 %vm61_vm1, %v23_v19 }
  0x29   :  { %355 = vmatmul.msk.f32.gmra.mxu2 %vm61_vm1, %v31_v20  ;;  %363 = vmatmul.msk.f32.gmra.mxu3 %vm61_vm1, %v39_v21 }
  0x2b   :  { %340 = vmatmul.msk.f32.gmra.mxu0 %vm61_vm1, %v16_v22  ;;  %348 = vmatmul.msk.f32.gmra.mxu1 %vm61_vm1, %v24_v23 }
  0x31   :  { %356 = vmatmul.msk.f32.gmra.mxu2 %vm61_vm1, %v32_v24  ;;  %364 = vmatmul.msk.f32.gmra.mxu3 %vm61_vm1, %v40_v25 }
  0x33   :  { %341 = vmatmul.msk.f32.gmra.mxu0 %vm61_vm1, %v17_v26  ;;  %349 = vmatmul.msk.f32.gmra.mxu1 %vm61_vm1, %v25_v27 }
  0x39   :  { %357 = vmatmul.msk.f32.gmra.mxu2 %vm61_vm1, %v33_v28  ;;  %365 = vmatmul.msk.f32.gmra.mxu3 %vm61_vm1, %v41_v29 }
  0x3b   :  { %342 = vmatmul.msk.f32.gmra.mxu0 %vm61_vm1, %v18_v30  ;;  %350 = vmatmul.msk.f32.gmra.mxu1 %vm61_vm1, %v26_v31 }
  0x41   :  { %358 = vmatmul.msk.f32.gmra.mxu2 %vm61_vm1, %v34_v32  ;;  %366 = vmatmul.msk.f32.gmra.mxu3 %vm61_vm1, %v42_v33 }
  0x43   :  { %343 = vmatmul.msk.f32.gmra.mxu0 %vm61_vm1, %v19_v34  ;;  %351 = vmatmul.msk.f32.gmra.mxu1 %vm61_vm1, %v27_v35 }
  0x49   :  { %359 = vmatmul.msk.f32.gmra.mxu2 %vm61_vm1, %v35_v36  ;;  %367 = vmatmul.msk.f32.gmra.mxu3 %vm61_vm1, %v43_v37 }
  0x4b   :  { %344 = vmatmul.msk.f32.gmra.mxu0 %vm61_vm1, %v20_v38  ;;  %352 = vmatmul.msk.f32.gmra.mxu1 %vm61_vm1, %v28_v39 }
  0x51   :  { %360 = vmatmul.msk.f32.gmra.mxu2 %vm61_vm1, %v36_v40  ;;  %368 = vmatmul.msk.f32.gmra.mxu3 %vm61_vm1, %v44_v41 }
  0x53   :  { %345 = vmatmul.msk.f32.gmra.mxu0 %vm61_vm1, %v21_v42 }
  0x98   :  { %v176_v44 = vpop.f32.mrf.mxu0  ;;  %v200_v45 = vpop.f32.mrf.mxu1 }
  0x99   :  { %v177_v46 = vadd.f32 %v589_v43, %v176_v44  ;;  %v201_v47 = vadd.f32 %v589_v43, %v200_v45 }
  0x9b   :  { %v269_v48 = vmax.f32 %v177_v46, 0.0  ;;  %v277_v49 = vmax.f32 %v201_v47, 0.0 }
  0x9c   :  { %v221_v50 = vpop.f32.mrf.mxu2  ;;  %v245_v51 = vpop.f32.mrf.mxu3 }
  0x9d   :  { %301 = vst.msk [vmem:[%s748_s3] sm:$0xff] %vm300_vm2, %v269_v48  ;;  %v222_v52 = vadd.f32 %v589_v43, %v221_v50  ;;  %v246_v53 = vadd.f32 %v589_v43, %v245_v51 }
  0x9e   :  { %309 = vst.msk [vmem:[%s748_s3 + $0x40] sm:$0xff] %vm300_vm2, %v277_v49 }
  0x9f   :  { %v284_v54 = vmax.f32 %v222_v52, 0.0  ;;  %v292_v55 = vmax.f32 %v246_v53, 0.0 }
  0xa0   :  { %v179_v56 = vpop.f32.mrf.mxu0  ;;  %v203_v57 = vpop.f32.mrf.mxu1 }
  0xa1   :  { %316 = vst.msk [vmem:[%s748_s3 + $0x78] sm:$0xff] %vm300_vm2, %v284_v54  ;;  %v180_v58 = vadd.f32 %v589_v43, %v179_v56  ;;  %v204_v59 = vadd.f32 %v589_v43, %v203_v57 }
  0xa2   :  { %324 = vst.msk [vmem:[%s748_s3 + $0xb8] sm:$0xff] %vm300_vm2, %v292_v55 }
  0xa3   :  { %v270_v60 = vmax.f32 %v180_v58, 0.0  ;;  %v278_v61 = vmax.f32 %v204_v59, 0.0 }
  0xa4   :  { %v224_v62 = vpop.f32.mrf.mxu2  ;;  %v248_v63 = vpop.f32.mrf.mxu3 }
  0xa5   :  { %302 = vst.msk [vmem:[%s748_s3 + $0x8] sm:$0xff] %vm300_vm2, %v270_v60  ;;  %v225_v0 = vadd.f32 %v589_v43, %v224_v62  ;;  %v249_v1 = vadd.f32 %v589_v43, %v248_v63 }
  0xa6   :  { %310 = vst.msk [vmem:[%s748_s3 + $0x48] sm:$0xff] %vm300_vm2, %v278_v61 }
  0xa7   :  { %v285_v2 = vmax.f32 %v225_v0, 0.0  ;;  %v293_v3 = vmax.f32 %v249_v1, 0.0 }
  0xa8   :  { %v182_v4 = vpop.f32.mrf.mxu0  ;;  %v206_v5 = vpop.f32.mrf.mxu1 }
  0xa9   :  { %317 = vst.msk [vmem:[%s748_s3 + $0x80] sm:$0xff] %vm300_vm2, %v285_v2  ;;  %v183_v6 = vadd.f32 %v589_v43, %v182_v4  ;;  %v207_v7 = vadd.f32 %v589_v43, %v206_v5 }
  0xaa   :  { %325 = vst.msk [vmem:[%s748_s3 + $0xc0] sm:$0xff] %vm300_vm2, %v293_v3 }
  0xab   :  { %v271_v8 = vmax.f32 %v183_v6, 0.0  ;;  %v279_v9 = vmax.f32 %v207_v7, 0.0 }
  0xac   :  { %v227_v10 = vpop.f32.mrf.mxu2  ;;  %v251_v11 = vpop.f32.mrf.mxu3 }
  0xad   :  { %303 = vst.msk [vmem:[%s748_s3 + $0x10] sm:$0xff] %vm300_vm2, %v271_v8  ;;  %v228_v12 = vadd.f32 %v589_v43, %v227_v10  ;;  %v252_v13 = vadd.f32 %v589_v43, %v251_v11 }
  0xae   :  { %311 = vst.msk [vmem:[%s748_s3 + $0x50] sm:$0xff] %vm300_vm2, %v279_v9 }
  0xaf   :  { %v286_v14 = vmax.f32 %v228_v12, 0.0  ;;  %v294_v15 = vmax.f32 %v252_v13, 0.0 }
  0xb0   :  { %v185_v16 = vpop.f32.mrf.mxu0  ;;  %v209_v17 = vpop.f32.mrf.mxu1 }
  0xb1   :  { %318 = vst.msk [vmem:[%s748_s3 + $0x88] sm:$0xff] %vm300_vm2, %v286_v14  ;;  %v186_v18 = vadd.f32 %v589_v43, %v185_v16  ;;  %v210_v19 = vadd.f32 %v589_v43, %v209_v17 }
  0xb2   :  { %326 = vst.msk [vmem:[%s748_s3 + $0xc8] sm:$0xff] %vm300_vm2, %v294_v15 }
  0xb3   :  { %v272_v20 = vmax.f32 %v186_v18, 0.0  ;;  %v280_v21 = vmax.f32 %v210_v19, 0.0 }
  0xb4   :  { %v230_v22 = vpop.f32.mrf.mxu2  ;;  %v254_v23 = vpop.f32.mrf.mxu3 }
  0xb5   :  { %304 = vst.msk [vmem:[%s748_s3 + $0x18] sm:$0xff] %vm300_vm2, %v272_v20  ;;  %v231_v24 = vadd.f32 %v589_v43, %v230_v22  ;;  %v255_v25 = vadd.f32 %v589_v43, %v254_v23 }
  0xb6   :  { %312 = vst.msk [vmem:[%s748_s3 + $0x58] sm:$0xff] %vm300_vm2, %v280_v21 }
  0xb7   :  { %v287_v26 = vmax.f32 %v231_v24, 0.0  ;;  %v295_v27 = vmax.f32 %v255_v25, 0.0 }
  0xb8   :  { %v188_v28 = vpop.f32.mrf.mxu0  ;;  %v212_v29 = vpop.f32.mrf.mxu1 }
  0xb9   :  { %319 = vst.msk [vmem:[%s748_s3 + $0x90] sm:$0xff] %vm300_vm2, %v287_v26  ;;  %v189_v30 = vadd.f32 %v589_v43, %v188_v28  ;;  %v213_v31 = vadd.f32 %v589_v43, %v212_v29 }
  0xba   :  { %327 = vst.msk [vmem:[%s748_s3 + $0xd0] sm:$0xff] %vm300_vm2, %v295_v27 }
  0xbb   :  { %v273_v32 = vmax.f32 %v189_v30, 0.0  ;;  %v281_v33 = vmax.f32 %v213_v31, 0.0 }
  0xbc   :  { %v233_v34 = vpop.f32.mrf.mxu2  ;;  %v257_v35 = vpop.f32.mrf.mxu3 }
  0xbd   :  { %305 = vst.msk [vmem:[%s748_s3 + $0x20] sm:$0xff] %vm300_vm2, %v273_v32  ;;  %v234_v36 = vadd.f32 %v589_v43, %v233_v34  ;;  %v258_v37 = vadd.f32 %v589_v43, %v257_v35 }
  0xbe   :  { %313 = vst.msk [vmem:[%s748_s3 + $0x60] sm:$0xff] %vm300_vm2, %v281_v33 }
  0xbf   :  { %v288_v38 = vmax.f32 %v234_v36, 0.0  ;;  %v296_v39 = vmax.f32 %v258_v37, 0.0 }
  0xc0   :  { %v191_v40 = vpop.f32.mrf.mxu0  ;;  %v215_v41 = vpop.f32.mrf.mxu1 }
  0xc1   :  { %320 = vst.msk [vmem:[%s748_s3 + $0x98] sm:$0xff] %vm300_vm2, %v288_v38  ;;  %v192_v42 = vadd.f32 %v589_v43, %v191_v40  ;;  %v216_v44 = vadd.f32 %v589_v43, %v215_v41 }
  0xc2   :  { %328 = vst.msk [vmem:[%s748_s3 + $0xd8] sm:$0xff] %vm300_vm2, %v296_v39 }
  0xc3   :  { %v274_v45 = vmax.f32 %v192_v42, 0.0  ;;  %v282_v46 = vmax.f32 %v216_v44, 0.0 }
  0xc4   :  { %v236_v47 = vpop.f32.mrf.mxu2  ;;  %v260_v48 = vpop.f32.mrf.mxu3 }
  0xc5   :  { %306 = vst.msk [vmem:[%s748_s3 + $0x28] sm:$0xff] %vm300_vm2, %v274_v45  ;;  %v237_v49 = vadd.f32 %v589_v43, %v236_v47  ;;  %v261_v50 = vadd.f32 %v589_v43, %v260_v48 }
  0xc6   :  { %314 = vst.msk [vmem:[%s748_s3 + $0x68] sm:$0xff] %vm300_vm2, %v282_v46 }
  0xc7   :  { %v289_v51 = vmax.f32 %v237_v49, 0.0  ;;  %v297_v52 = vmax.f32 %v261_v50, 0.0 }
  0xc8   :  { %v194_v53 = vpop.f32.mrf.mxu0  ;;  %v218_v54 = vpop.f32.mrf.mxu1 }
  0xc9   :  { %321 = vst.msk [vmem:[%s748_s3 + $0xa0] sm:$0xff] %vm300_vm2, %v289_v51  ;;  %v195_v55 = vadd.f32 %v589_v43, %v194_v53  ;;  %v219_v56 = vadd.f32 %v589_v43, %v218_v54 }
  0xca   :  { %329 = vst.msk [vmem:[%s748_s3 + $0xe0] sm:$0xff] %vm300_vm2, %v297_v52 }
  0xcb   :  { %v275_v57 = vmax.f32 %v195_v55, 0.0  ;;  %v283_v58 = vmax.f32 %v219_v56, 0.0 }
  0xcc   :  { %v239_v59 = vpop.f32.mrf.mxu2  ;;  %v263_v60 = vpop.f32.mrf.mxu3 }
  0xcd   :  { %307 = vst.msk [vmem:[%s748_s3 + $0x30] sm:$0xff] %vm300_vm2, %v275_v57  ;;  %v240_v61 = vadd.f32 %v589_v43, %v239_v59  ;;  %v264_v62 = vadd.f32 %v589_v43, %v263_v60 }
  0xce   :  { %315 = vst.msk [vmem:[%s748_s3 + $0x70] sm:$0xff] %vm300_vm2, %v283_v58 }
  0xcf   :  { %v290_v63 = vmax.f32 %v240_v61, 0.0  ;;  %v298_v0 = vmax.f32 %v264_v62, 0.0 }
  0xd0   :  { %v197_v1 = vpop.f32.mrf.mxu0 }
  0xd1   :  { %322 = vst.msk [vmem:[%s748_s3 + $0xa8] sm:$0xff] %vm300_vm2, %v290_v63  ;;  %v198_v2 = vadd.f32 %v589_v43, %v197_v1 }
  0xd2   :  { %330 = vst.msk [vmem:[%s748_s3 + $0xe8] sm:$0xff] %vm300_vm2, %v298_v0 }
  0xd3   :  { %v276_v3 = vmax.f32 %v198_v2, 0.0 }
  0xd4   :  { %v242_v4 = vpop.f32.mrf.mxu2  ;;  %v266_v5 = vpop.f32.mrf.mxu3 }
  0xd5   :  { %308 = vst.msk [vmem:[%s748_s3 + $0x38] sm:$0xff] %vm300_vm2, %v276_v3  ;;  %v243_v6 = vadd.f32 %v589_v43, %v242_v4  ;;  %v267_v7 = vadd.f32 %v589_v43, %v266_v5 }
  0xd7   :  { %v291_v8 = vmax.f32 %v243_v6, 0.0  ;;  %v299_v9 = vmax.f32 %v267_v7, 0.0 }
  0xd9   :  { %323 = vst.msk [vmem:[%s748_s3 + $0xb0] sm:$0xff] %vm300_vm2, %v291_v8 }
  0xda   :  { %332 = vst.msk [vmem:[%s748_s3 + $0xf0] sm:$0x3] %vm331_vm3, %v299_v9 }

// kernel: net_forward.5
= control target key start
LH: loop header
LB: loop body
LE: loop exit
PB: predicated region body
PF: predicated region fallthrough
CT: control target
= control target key end

     0   :  { %vm72_vm0 = vcmask 1041408   ;;  %vm138_vm1 = vcmask 1043456   ;;  %s470_s0 = inlined_call_operand.vmem [shape: f32[2,250], index: 0, kind: input, shape index: {}]   ;;  %s471_s1 = inlined_call_operand.vmem [shape: f32[250,100], index: 1, kind: input, shape index: {}]   ;;  %s472_s2 = inlined_call_operand.vmem [shape: f32[1,100], index: 2, kind: input, shape index: {}]   ;;  %s473_s3 = inlined_call_operand.vmem [shape: f32[100,50], index: 3, kind: input, shape index: {}]   ;;  %s474_s4 = inlined_call_operand.vmem [shape: f32[1,50], index: 4, kind: input, shape index: {}]   ;;  %s475_s5 = inlined_call_operand.vmem [shape: f32[50,10], index: 5, kind: input, shape index: {}]   ;;  %s476_s6 = inlined_call_operand.vmem [shape: f32[1,10], index: 6, kind: input, shape index: {}]   ;;  %s477_s7 = inlined_call_operand.hbm [shape: f32[2,10], index: 7, kind: output, shape index: {}]  }
   0x1   :  { %v43_v0 = vld [vmem:[%s471_s1 + $0x78] sm:$0xff]  ;;  %v42_v1 = vld [vmem:[%s471_s1 + $0x70] sm:$0xff]  ;;  %v41_v4 = vld [vmem:[%s471_s1 + $0x68] sm:$0xff] }
   0x2   :  { %v59_v2 = vld [vmem:[%s471_s1 + $0xf8] sm:$0x3]  ;;  %76 = vmatpush.msra.mxu0 %v43_v0  ;;  %v58_v3 = vld [vmem:[%s471_s1 + $0xf0] sm:$0xff]  ;;  %v57_v5 = vld [vmem:[%s471_s1 + $0xe8] sm:$0xff] }
   0x3   :  { %220 = vmatpush.msk.msra.mxu1 %vm72_vm0, %v59_v2  ;;  %v40_v6 = vld [vmem:[%s471_s1 + $0x60] sm:$0xff]  ;;  %v39_v8 = vld [vmem:[%s471_s1 + $0x58] sm:$0xff]  ;;  %v38_v10 = vld [vmem:[%s471_s1 + $0x50] sm:$0xff] }
   0x4   :  { %77 = vmatpush.msra.mxu0 %v42_v1  ;;  %v56_v7 = vld [vmem:[%s471_s1 + $0xe0] sm:$0xff]  ;;  %v55_v9 = vld [vmem:[%s471_s1 + $0xd8] sm:$0xff]  ;;  %v54_v11 = vld [vmem:[%s471_s1 + $0xd0] sm:$0xff] }
   0x5   :  { %97 = vmatpush.msra.mxu1 %v58_v3  ;;  %v37_v12 = vld [vmem:[%s471_s1 + $0x48] sm:$0xff]  ;;  %v27_v14 = vld [vmem:[%s470_s0] sm:$0xf]  ;;  %v128_v16 = vld [vmem:[%s473_s3 + $0x58] sm:$0xff] }
   0x6   :  { %78 = vmatpush.msra.mxu0 %v41_v4  ;;  %v53_v13 = vld [vmem:[%s471_s1 + $0xc8] sm:$0xff]  ;;  %65 = vst [vmem:[#allocation1] ss:$4 sm:$0xff] %v27_v14  ;;  %v129_v15 = vld [vmem:[%s473_s3 + $0x60] sm:$0xf]  ;;  %v35_v19 = vld [vmem:[%s471_s1 + $0x38] sm:$0xff] }
   0x7   :  { %98 = vmatpush.msra.mxu1 %v57_v5  ;;  %v36_v17 = vld [vmem:[%s471_s1 + $0x40] sm:$0xff]  ;;  %222 = vmatpush.msk.msra.mxu2 %vm138_vm1, %v129_v15  ;;  %v127_v20 = vld [vmem:[%s473_s3 + $0x50] sm:$0xff]  ;;  %v51_v21 = vld [vmem:[%s471_s1 + $0xb8] sm:$0xff] }
   0x8   :  { %79 = vmatpush.msra.mxu0 %v40_v6  ;;  %v52_v18 = vld [vmem:[%s471_s1 + $0xc0] sm:$0xff]  ;;  %v126_v22 = vld [vmem:[%s473_s3 + $0x48] sm:$0xff] }
   0x9   :  { %99 = vmatpush.msra.mxu1 %v56_v7  ;;  %146 = vmatpush.msra.mxu2 %v128_v16 }
   0xa   :  { %80 = vmatpush.msra.mxu0 %v39_v8 }
   0xb   :  { %100 = vmatpush.msra.mxu1 %v55_v9 }
   0xc   :  { %81 = vmatpush.msra.mxu0 %v38_v10 }
   0xd   :  { %101 = vmatpush.msra.mxu1 %v54_v11 }
   0xe   :  { %82 = vmatpush.msra.mxu0 %v37_v12 }
   0xf   :  { %102 = vmatpush.msra.mxu1 %v53_v13 }
  0x10   :  { %83 = vmatpush.msra.mxu0 %v36_v17 }
  0x11   :  { %103 = vmatpush.msra.mxu1 %v52_v18 }
  0x12   :  { %12 = vsyncpa [#allocation3], 0  ;;  %v34_v23 = vld [vmem:[%s471_s1 + $0x30] sm:$0xff]  ;;  %147 = vmatpush.msra.mxu2 %v127_v20  ;;  %84 = vmatpush.msra.mxu0 %v35_v19  ;;  %v125_v25 = vld [vmem:[%s473_s3 + $0x40] sm:$0xff]  ;;  %vm69_vm2 = vcmask 998400   ;;  %vm134_vm3 = vcmask 818176  }
  0x13   :  { %v50_v24 = vld [vmem:[%s471_s1 + $0xb0] sm:$0xff]  ;;  %104 = vmatpush.msra.mxu1 %v51_v21  ;;  %v33_v26 = vld [vmem:[%s471_s1 + $0x28] sm:$0xff]  ;;  %v124_v28 = vld [vmem:[%s473_s3 + $0x38] sm:$0xff]  ;;  %vm174_vm4 = vcmask 408576   ;;  %s256_s15 = smov [#allocation2]   ;;  %vm202_vm5 = vcmask 74752  }
  0x14   :  { %v49_v27 = vld [vmem:[%s471_s1 + $0xa8] sm:$0xff]  ;;  %148 = vmatpush.msra.mxu2 %v126_v22  ;;  %85 = vmatpush.msra.mxu0 %v34_v23  ;;  %v32_v29 = vld [vmem:[%s471_s1 + $0x20] sm:$0xff]  ;;  %v123_v31 = vld [vmem:[%s473_s3 + $0x30] sm:$0xff]  ;;  %s209_s0 = sshll.u32 %s256_s15, 4  ;;  %s210_s0 = int_to_ptr.vmem [resolvable:$true] %s209_s0 }
  0x15   :  { %105 = vmatpush.msra.mxu1 %v50_v24  ;;  %v48_v30 = vld [vmem:[%s471_s1 + $0xa0] sm:$0xff]  ;;  %v31_v32 = vld [vmem:[%s471_s1 + $0x18] sm:$0xff]  ;;  %v122_v34 = vld [vmem:[%s473_s3 + $0x28] sm:$0xff] }
  0x16   :  { %149 = vmatpush.msra.mxu2 %v125_v25  ;;  %86 = vmatpush.msra.mxu0 %v33_v26  ;;  %v47_v33 = vld [vmem:[%s471_s1 + $0x98] sm:$0xff]  ;;  %v30_v35 = vld [vmem:[%s471_s1 + $0x10] sm:$0xff]  ;;  %v121_v37 = vld [vmem:[%s473_s3 + $0x20] sm:$0xff] }
  0x17   :  { %106 = vmatpush.msra.mxu1 %v49_v27  ;;  %v46_v36 = vld [vmem:[%s471_s1 + $0x90] sm:$0xff]  ;;  %v29_v38 = vld [vmem:[%s471_s1 + $0x8] sm:$0xff]  ;;  %v28_v40 = vld [vmem:[%s471_s1] sm:$0xff] }
  0x18   :  { %150 = vmatpush.msra.mxu2 %v124_v28  ;;  %87 = vmatpush.msra.mxu0 %v32_v29  ;;  %v45_v39 = vld [vmem:[%s471_s1 + $0x88] sm:$0xff]  ;;  %v44_v41 = vld [vmem:[%s471_s1 + $0x80] sm:$0xff]  ;;  %v120_v44 = vld [vmem:[%s473_s3 + $0x18] sm:$0xff] }
  0x19   :  { %107 = vmatpush.msra.mxu1 %v48_v30  ;;  %v66_v42 = vld.sshfl [vmem:[#allocation1] sm:$0xff pattern:$0x73625140]  ;;  %v67_v43 = vld.sshfl [vmem:[#allocation1 + $0x8] sm:$0xff pattern:$0x73625140] }
  0x1a   :  { %151 = vmatpush.msra.mxu2 %v123_v31  ;;  %88 = vmatpush.msra.mxu0 %v31_v32  ;;  %v119_v45 = vld [vmem:[%s473_s3 + $0x10] sm:$0xff]  ;;  %v118_v46 = vld [vmem:[%s473_s3 + $0x8] sm:$0xff]  ;;  %v117_v47 = vld [vmem:[%s473_s3] sm:$0xff] }
  0x1b   :  { %108 = vmatpush.msra.mxu1 %v47_v33  ;;  %v169_v48 = vld [vmem:[%s475_s5 + $0x30] sm:$0x3]  ;;  %v168_v49 = vld [vmem:[%s475_s5 + $0x28] sm:$0xff]  ;;  %v167_v50 = vld [vmem:[%s475_s5 + $0x20] sm:$0xff] }
  0x1c   :  { %152 = vmatpush.msra.mxu2 %v122_v34  ;;  %89 = vmatpush.msra.mxu0 %v30_v35  ;;  %v166_v51 = vld [vmem:[%s475_s5 + $0x18] sm:$0xff]  ;;  %v227_v52 = vld [vmem:[%s472_s2] ss:$0 sm:$0xff]  ;;  %v165_v58 = vld [vmem:[%s475_s5 + $0x10] sm:$0xff] }
  0x1d   :  { %109 = vmatpush.msra.mxu1 %v46_v36  ;;  %224 = vmatpush.msk.msra.mxu3 %vm72_vm0, %v169_v48  ;;  %v164_v59 = vld [vmem:[%s475_s5 + $0x8] sm:$0xff]  ;;  %v163_v60 = vld [vmem:[%s475_s5] sm:$0xff]  ;;  %s211_s5 = sshll.u32 %s477_s7, 4  ;;  %s212_s5 = int_to_ptr.hbm [resolvable:$true] %s211_s5 }
  0x1e   :  { %153 = vmatpush.msra.mxu2 %v121_v37  ;;  %90 = vmatpush.msra.mxu0 %v29_v38  ;;  %v228_v61 = vld [vmem:[%s474_s4] ss:$0 sm:$0xff] }
  0x1f   :  { %110 = vmatpush.msra.mxu1 %v45_v39  ;;  %191 = vmatpush.msra.mxu3 %v168_v49  ;;  %v229_v1 = vld [vmem:[%s476_s6] ss:$0 sm:$0xff] }
  0x20   :  { %91 = vmatpush.msra.mxu0 %v28_v40  ;;  %154 = vmatpush.msra.mxu2 %v120_v44 }
  0x21   :  { %111 = vmatpush.msra.mxu1 %v44_v41  ;;  %92 = vmatmul.f32.vlgmr.msra.gmra.mxu0 %v66_v42 }
  0x22   :  { %221 = vmatmul.msk.f32.vlgmr.msra.gmra.mxu1 %vm69_vm2, %v67_v43  ;;  %155 = vmatpush.msra.mxu2 %v119_v45 }
  0x23   :  { %192 = vmatpush.msra.mxu3 %v167_v50 }
  0x24   :  { %156 = vmatpush.msra.mxu2 %v118_v46 }
  0x25   :  { %193 = vmatpush.msra.mxu3 %v166_v51 }
  0x26   :  { %157 = vmatpush.msra.mxu2 %v117_v47 }
  0x27   :  { %194 = vmatpush.msra.mxu3 %v165_v58 }
  0x29   :  { %195 = vmatpush.msra.mxu3 %v164_v59 }
  0x2b   :  { %196 = vmatpush.msra.mxu3 %v163_v60 }
  0x9e   :  { %v93_v53 = vpop.f32.mrf.mxu0 }
  0x9f   :  { %v113_v54 = vpop.f32.mrf.mxu1  ;;  %v94_v55 = vadd.f32 %v227_v52, %v93_v53 }
  0xa1   :  { %v114_v56 = vadd.f32 %v113_v54, %v94_v55 }
  0xa3   :  { %v116_v57 = vmax.f32 %v114_v56, 0.0 }
  0xa5   :  { %223 = vmatmul.msk.f32.vlgmr.msra.gmra.mxu2 %vm134_vm3, %v116_v57 }
 0x128   :  { %v159_v62 = vpop.f32.mrf.mxu2 }
 0x129   :  { %v160_v63 = vadd.f32 %v228_v61, %v159_v62 }
 0x12b   :  { %v162_v0 = vmax.f32 %v160_v63, 0.0 }
 0x12d   :  { %225 = vmatmul.msk.f32.vlgmr.msra.gmra.mxu3 %vm174_vm4, %v162_v0 }
 0x1b0   :  { %v198_v2 = vpop.f32.mrf.mxu3 }
 0x1b1   :  { %v199_v3 = vadd.f32 %v229_v1, %v198_v2 }
 0x1b3   :  { %v201_v4 = vmax.f32 %v199_v3, 0.0 }
 0x1b5   :  { %203 = vst.msk [vmem:[#allocation2] sm:$0x3] %vm202_vm5, %v201_v4 }
 0x1b6   :  { %214 = dma.vmem_to_hbm [thread:$0]  %s210_s0, 32, %s212_s5, [#allocation3]  }
 0x1b7   :  { %254 = dma.done.wait [#allocation3], 32  }
 0x1b8   :  { %255 = vsyncadd [#allocation3], 4294967264 }
 0x1b9   :  { %219 = vsyncpa [#allocation3], 1 }

</bundles_post_ra>
